<compile_context>
chip_gen: v7x
topology: tpu7x:2x2x1
jax: 0.10.0
libtpu: 0.0.40
codegen_flags: <defaults>
</compile_context>

<pallas_src>
import functools
import math

import jax
import jax.numpy as jnp
from jax.experimental import pallas as pl
from jax.experimental.pallas import tpu as pltpu

# Scale-mixture prior hyperparameters (PI, SIGMA_1, SIGMA_2 from __init__).
PI = 0.5
SIGMA_1 = 1.0
SIGMA_2 = math.exp(-6.0)

LOG_SQRT_2PI = math.log(math.sqrt(2.0 * math.pi))
# Prior constants precomputed so the kernel has no divides.
_C1 = -math.log(SIGMA_1) - 0.5 * math.log(2.0 * math.pi)
_C2 = -math.log(SIGMA_2) - 0.5 * math.log(2.0 * math.pi)
_INV_2S1SQ = 1.0 / (2.0 * SIGMA_1 ** 2)
_INV_2S2SQ = 1.0 / (2.0 * SIGMA_2 ** 2)
_LOG_PI = math.log(PI)
_LOG_1MPI = math.log(1.0 - PI)


def _softplus(x):
    # stable log1p(exp(x)); exp argument clamped so the unselected branch is finite.
    return jnp.where(x > 20.0, x, jnp.log1p(jnp.exp(jnp.minimum(x, 20.0))))


def _mixture_logprob_sum(v, mask):
    # log( PI*N(v;0,s1) + (1-PI)*N(v;0,s2) ) in stable log-sum-exp form, masked sum.
    a1 = _LOG_PI + _C1 - v * v * _INV_2S1SQ
    a2 = _LOG_1MPI + _C2 - v * v * _INV_2S2SQ
    m = jnp.maximum(a1, a2)
    lp = m + jnp.log(jnp.exp(a1 - m) + jnp.exp(a2 - m))
    return jnp.sum(lp * mask)


# ---------------------------------------------------------------------------
# Fused kernel: sample (optional) + F.linear + log_prior/log_var_post (optional)
# Grid: (num_O_tiles,). Static flags select which refs exist.
# ---------------------------------------------------------------------------
def _bayes_fused_kernel(*refs, sample, want_logp, tile_o, o_valid):
    it = iter(refs)
    x_ref = next(it)
    wmu_ref = next(it)
    wrho_ref = next(it) if (sample or want_logp) else None
    weps_ref = next(it) if sample else None
    bmu_ref = next(it)
    brho_ref = next(it) if (sample or want_logp) else None
    beps_ref = next(it) if sample else None
    o_ref = next(it)
    lp_ref = next(it) if want_logp else None
    lvp_ref = next(it) if want_logp else None

    wmu = wmu_ref[...]
    bmu = bmu_ref[...]

    if sample or want_logp:
        w_sigma = _softplus(wrho_ref[...])
        b_sigma = _softplus(brho_ref[...])

    if sample:
        weps = weps_ref[...]
        beps = beps_ref[...]
        w = wmu + w_sigma * weps
        b = bmu + b_sigma * beps
    else:
        w = wmu
        b = bmu

    # F.linear: x @ W^T + b. Contract x axis 1 with W axis 1 directly so the
    # weight tile is fed to the MXU in its native (O, I) layout (no transpose).
    acc = jax.lax.dot_general(
        x_ref[...], w,
        dimension_numbers=(((1,), (1,)), ((), ())),
        preferred_element_type=jnp.float32)
    o_ref[...] = (acc + b).astype(o_ref.dtype)

    if want_logp:
        o_idx = pl.program_id(0)
        # Mask out rows/lanes that only exist because O was padded to a
        # lane-dense multiple of 128.
        row = o_idx * tile_o + jax.lax.broadcasted_iota(jnp.int32, w.shape, 0)
        w_mask = (row < o_valid).astype(jnp.float32)
        lane = o_idx * tile_o + jax.lax.broadcasted_iota(jnp.int32, b.shape, 1)
        b_mask = (lane < o_valid).astype(jnp.float32)

        tile_lp = _mixture_logprob_sum(w, w_mask) + _mixture_logprob_sum(b, b_mask)

        # Gaussian posterior: (w - mu)^2 / (2 sigma^2) == 0.5 * eps^2 exactly
        # under the reparameterization; it is exactly 0 on the mu-only path.
        w_quad = 0.5 * weps * weps if sample else 0.0
        b_quad = 0.5 * beps * beps if sample else 0.0
        tile_lvp = (jnp.sum((-LOG_SQRT_2PI - jnp.log(w_sigma) - w_quad) * w_mask)
                    + jnp.sum((-LOG_SQRT_2PI - jnp.log(b_sigma) - b_quad) * b_mask))

        @pl.when(o_idx == 0)
        def _():
            lp_ref[0, 0] = jnp.float32(0.0)
            lvp_ref[0, 0] = jnp.float32(0.0)

        lp_ref[0, 0] += tile_lp
        lvp_ref[0, 0] += tile_lvp


# ---------------------------------------------------------------------------
# Wrapper
# ---------------------------------------------------------------------------
def _round_up(x, m):
    return (x + m - 1) // m * m


def _choose_tile_o(o, i):
    # Largest lane-dense O tile (multiple of 128, capped at 512) whose three
    # weight-sized f32 blocks stay under ~6 MiB per pipeline buffer, so the
    # double-buffered working set fits the 32 MiB scoped-VMEM budget on
    # v5e/v6e/v7x alike.
    budget_rows = max(128, (6 * 1024 * 1024) // (3 * 4 * max(i, 1)))
    cap = max(128, (budget_rows // 128) * 128)
    return min(cap, 512, _round_up(o, 128))
    # TODO(synk): for very large in_features also tile over I (needs a matmul
    # accumulator grid axis); not needed at these layer sizes.


def bayesian_layer_forward(params, x, eps_w=None, eps_b=None, *,
                           sample=True, calculate_log_probs=True):
    w_mu, w_rho, b_mu, b_rho = params
    O, I = w_mu.shape
    B = x.shape[0]

    tile_o = _choose_tile_o(O, I)
    o_pad = _round_up(O, tile_o)
    b_pad = _round_up(B, 8)
    n_o = o_pad // tile_o

    def pad_w(a):
        return jnp.pad(a, ((0, o_pad - O), (0, 0))) if o_pad != O else a

    def pad_bias(a):
        a = a.reshape(1, O)
        return jnp.pad(a, ((0, 0), (0, o_pad - O))) if o_pad != O else a

    x_p = jnp.pad(x, ((0, b_pad - B), (0, 0))) if b_pad != B else x

    need_rho = sample or calculate_log_probs

    x_spec = pl.BlockSpec((b_pad, I), lambda o: (0, 0))
    w_spec = pl.BlockSpec((tile_o, I), lambda o: (o, 0))
    bias_spec = pl.BlockSpec((1, tile_o), lambda o: (0, o))
    out_spec = pl.BlockSpec((b_pad, tile_o), lambda o: (0, o))
    smem_spec = pl.BlockSpec(memory_space=pltpu.MemorySpace.SMEM)

    args = [x_p, pad_w(w_mu)]
    in_specs = [x_spec, w_spec]
    if need_rho:
        args.append(pad_w(w_rho)); in_specs.append(w_spec)
    if sample:
        args.append(pad_w(eps_w)); in_specs.append(w_spec)
    args.append(pad_bias(b_mu)); in_specs.append(bias_spec)
    if need_rho:
        args.append(pad_bias(b_rho)); in_specs.append(bias_spec)
    if sample:
        args.append(pad_bias(eps_b)); in_specs.append(bias_spec)

    if calculate_log_probs:
        out_shape = (jax.ShapeDtypeStruct((b_pad, o_pad), jnp.float32),
                     jax.ShapeDtypeStruct((1, 1), jnp.float32),
                     jax.ShapeDtypeStruct((1, 1), jnp.float32))
        out_specs = (out_spec, smem_spec, smem_spec)
    else:
        out_shape = jax.ShapeDtypeStruct((b_pad, o_pad), jnp.float32)
        out_specs = out_spec

    kernel = functools.partial(
        _bayes_fused_kernel,
        sample=sample, want_logp=calculate_log_probs,
        tile_o=tile_o, o_valid=O)

    results = pl.pallas_call(
        kernel,
        grid=(n_o,),
        in_specs=in_specs,
        out_specs=out_specs,
        out_shape=out_shape,
        compiler_params=pltpu.CompilerParams(
            # The O axis carries the scalar log-prob accumulation, so it is
            # "arbitrary"; on v7x one would emit per-tile partial sums instead
            # to shard it across the two TensorCores.
            dimension_semantics=("arbitrary",),
            vmem_limit_bytes=32 * 1024 * 1024),
    )(*args)

    if calculate_log_probs:
        out_p, lp, lvp = results
        log_prior = lp[0, 0]
        log_var_post = lvp[0, 0]
    else:
        out_p = results
        log_prior = jnp.float32(0.0)
        log_var_post = jnp.float32(0.0)

    return out_p[:B, :O], log_prior, log_var_post


# ---------------------------------------------------------------------------
# Pure-JAX reference for sanity checking
# ---------------------------------------------------------------------------
def reference_forward(params, x, eps_w, eps_b):
    w_mu, w_rho, b_mu, b_rho = params
    w_sigma = jnp.log1p(jnp.exp(w_rho))
    b_sigma = jnp.log1p(jnp.exp(b_rho))
    w = w_mu + w_sigma * eps_w
    b = b_mu + b_sigma * eps_b
    out = x @ w.T + b

    def mix_lp(v):
        lp1 = -math.log(SIGMA_1) - 0.5 * math.log(2 * math.pi) - v ** 2 / (2 * SIGMA_1 ** 2)
        lp2 = -math.log(SIGMA_2) - 0.5 * math.log(2 * math.pi) - v ** 2 / (2 * SIGMA_2 ** 2)
        return jnp.sum(jnp.log(PI * jnp.exp(lp1) + (1 - PI) * jnp.exp(lp2)))

    def gauss_lp(v, mu, sigma):
        return jnp.sum(-LOG_SQRT_2PI - jnp.log(sigma) - (v - mu) ** 2 / (2 * sigma ** 2))

    lp = mix_lp(w) + mix_lp(b)
    lvp = gauss_lp(w, w_mu, w_sigma) + gauss_lp(b, b_mu, b_sigma)
    return out, lp, lvp


if __name__ == "__main__":
    batch, in_features, out_features = 8, 32, 16

    key = jax.random.PRNGKey(0)
    k_wmu, k_wrho, k_bmu, k_brho, k_x, k_ew, k_eb = jax.random.split(key, 7)

    # nn.Parameter(...).uniform_(-1, 1) deterministic init
    w_mu = jax.random.uniform(k_wmu, (out_features, in_features), jnp.float32, -1.0, 1.0)
    w_rho = jax.random.uniform(k_wrho, (out_features, in_features), jnp.float32, -1.0, 1.0)
    b_mu = jax.random.uniform(k_bmu, (out_features,), jnp.float32, -1.0, 1.0)
    b_rho = jax.random.uniform(k_brho, (out_features,), jnp.float32, -1.0, 1.0)
    params = (w_mu, w_rho, b_mu, b_rho)

    x = jax.random.normal(k_x, (batch, in_features), jnp.float32)
    eps_w = jax.random.normal(k_ew, (out_features, in_features), jnp.float32)
    eps_b = jax.random.normal(k_eb, (out_features,), jnp.float32)

    # training path: sample + log-probs, fully fused
    out, log_prior, log_var_post = bayesian_layer_forward(
        params, x, eps_w, eps_b, sample=True, calculate_log_probs=True)
    jax.block_until_ready((out, log_prior, log_var_post))

    ref_out, ref_lp, ref_lvp = reference_forward(params, x, eps_w, eps_b)
    assert jnp.allclose(out, ref_out, rtol=1e-4, atol=1e-4)
    assert jnp.allclose(log_prior, ref_lp, rtol=1e-3, atol=1e-2)
    assert jnp.allclose(log_var_post, ref_lvp, rtol=1e-3, atol=1e-2)

    # cheap eval path: mu weights only, no eps / softplus / log-prob work
    out_eval, lp0, lvp0 = bayesian_layer_forward(
        params, x, sample=False, calculate_log_probs=False)
    jax.block_until_ready(out_eval)
    assert jnp.allclose(out_eval, x @ w_mu.T + b_mu, rtol=1e-4, atol=1e-4)
    assert float(lp0) == 0.0 and float(lvp0) == 0.0

    print("KERNEL_OK")
</pallas_src>

<mosaic_0001>
module attributes {stable_mosaic.version = 11 : i64} {
  func.func @_bayes_fused_kernel(%arg0: i32, %arg1: memref<8x32xf32, #tpu.memory_space<vmem>>, %arg2: memref<128x32xf32, #tpu.memory_space<vmem>>, %arg3: memref<128x32xf32, #tpu.memory_space<vmem>>, %arg4: memref<128x32xf32, #tpu.memory_space<vmem>>, %arg5: memref<1x128xf32, #tpu.memory_space<vmem>>, %arg6: memref<1x128xf32, #tpu.memory_space<vmem>>, %arg7: memref<1x128xf32, #tpu.memory_space<vmem>>, %arg8: memref<8x128xf32, #tpu.memory_space<vmem>>, %arg9: memref<1x1xf32, #tpu.memory_space<smem>>, %arg10: memref<1x1xf32, #tpu.memory_space<smem>>) attributes {dimension_semantics = [#tpu.dimension_semantics<arbitrary>], iteration_bounds = array<i64: 1>, scalar_prefetch = 0 : i64, scratch_operands = 0 : i64, tpu.core_type = #tpu.core_type<tc>, window_params = [{pipeline_mode = #tpu.pipeline_mode<synchronous>, transform_indices = @transform_0, window_bounds = array<i64: 8, 32>}, {transform_indices = @transform_1, window_bounds = array<i64: 128, 32>}, {transform_indices = @transform_2, window_bounds = array<i64: 128, 32>}, {transform_indices = @transform_3, window_bounds = array<i64: 128, 32>}, {transform_indices = @transform_4, window_bounds = array<i64: 1, 128>}, {transform_indices = @transform_5, window_bounds = array<i64: 1, 128>}, {transform_indices = @transform_6, window_bounds = array<i64: 1, 128>}, {transform_indices = @transform_7, window_bounds = array<i64: 8, 128>}, {transform_indices = @transform_8, window_bounds = array<i64: 1, 1>}, {transform_indices = @transform_9, window_bounds = array<i64: 1, 1>}]} {
    %c0 = arith.constant 0 : index
    %c0_0 = arith.constant 0 : index
    %0 = vector.load %arg2[%c0, %c0_0] : memref<128x32xf32, #tpu.memory_space<vmem>>, vector<128x32xf32>
    %c0_1 = arith.constant 0 : index
    %c0_2 = arith.constant 0 : index
    %1 = vector.load %arg5[%c0_1, %c0_2] : memref<1x128xf32, #tpu.memory_space<vmem>>, vector<1x128xf32>
    %c0_3 = arith.constant 0 : index
    %c0_4 = arith.constant 0 : index
    %2 = vector.load %arg3[%c0_3, %c0_4] : memref<128x32xf32, #tpu.memory_space<vmem>>, vector<128x32xf32>
    %cst = arith.constant 2.000000e+01 : f32
    %3 = vector.broadcast %cst : f32 to vector<128x32xf32>
    %4 = arith.cmpf ogt, %2, %3 : vector<128x32xf32>
    %cst_5 = arith.constant 2.000000e+01 : f32
    %5 = vector.broadcast %cst_5 : f32 to vector<128x32xf32>
    %6 = arith.minimumf %2, %5 : vector<128x32xf32>
    %7 = math.exp %6 : vector<128x32xf32>
    %8 = math.log1p %7 : vector<128x32xf32>
    %9 = arith.select %4, %2, %8 : vector<128x32xi1>, vector<128x32xf32>
    %c0_6 = arith.constant 0 : index
    %c0_7 = arith.constant 0 : index
    %10 = vector.load %arg6[%c0_6, %c0_7] : memref<1x128xf32, #tpu.memory_space<vmem>>, vector<1x128xf32>
    %cst_8 = arith.constant 2.000000e+01 : f32
    %11 = vector.broadcast %cst_8 : f32 to vector<1x128xf32>
    %12 = arith.cmpf ogt, %10, %11 : vector<1x128xf32>
    %cst_9 = arith.constant 2.000000e+01 : f32
    %13 = vector.broadcast %cst_9 : f32 to vector<1x128xf32>
    %14 = arith.minimumf %10, %13 : vector<1x128xf32>
    %15 = math.exp %14 : vector<1x128xf32>
    %16 = math.log1p %15 : vector<1x128xf32>
    %17 = arith.select %12, %10, %16 : vector<1x128xi1>, vector<1x128xf32>
    %c0_10 = arith.constant 0 : index
    %c0_11 = arith.constant 0 : index
    %18 = vector.load %arg4[%c0_10, %c0_11] : memref<128x32xf32, #tpu.memory_space<vmem>>, vector<128x32xf32>
    %c0_12 = arith.constant 0 : index
    %c0_13 = arith.constant 0 : index
    %19 = vector.load %arg7[%c0_12, %c0_13] : memref<1x128xf32, #tpu.memory_space<vmem>>, vector<1x128xf32>
    %20 = arith.mulf %9, %18 : vector<128x32xf32>
    %21 = arith.addf %0, %20 : vector<128x32xf32>
    %22 = arith.mulf %17, %19 : vector<1x128xf32>
    %23 = arith.addf %1, %22 : vector<1x128xf32>
    %c0_14 = arith.constant 0 : index
    %c0_15 = arith.constant 0 : index
    %24 = vector.load %arg1[%c0_14, %c0_15] : memref<8x32xf32, #tpu.memory_space<vmem>>, vector<8x32xf32>
    %cst_16 = arith.constant dense<0.000000e+00> : vector<8x128xf32>
    %25 = tpu.matmul %24, %21, %cst_16 {dimension_numbers = #tpu.dot_dimension_numbers<[1], [1], [0], [0], [0, 0, 1, 0], [], []>} : vector<8x32xf32>, vector<128x32xf32>, vector<8x128xf32> -> vector<8x128xf32>
    %26 = vector.broadcast %23 : vector<1x128xf32> to vector<8x128xf32>
    %27 = arith.addf %25, %26 : vector<8x128xf32>
    %c0_17 = arith.constant 0 : index
    %c0_18 = arith.constant 0 : index
    %28 = vector.load %arg8[%c0_17, %c0_18] : memref<8x128xf32, #tpu.memory_space<vmem>>, vector<8x128xf32>
    tpu.vector_store %arg8[%c0_17, %c0_18], %27 {strides = array<i32>} : memref<8x128xf32, #tpu.memory_space<vmem>>, vector<8x128xf32>,
    %c128_i32 = arith.constant 128 : i32
    %29 = arith.muli %arg0, %c128_i32 : i32
    %30 = tpu.iota {dimensions = array<i32: 0>} : vector<128x32xi32>
    %31 = vector.broadcast %29 : i32 to vector<128x32xi32>
    %32 = arith.addi %31, %30 : vector<128x32xi32>
    %c16_i32 = arith.constant 16 : i32
    %33 = vector.broadcast %c16_i32 : i32 to vector<128x32xi32>
    %34 = arith.cmpi slt, %32, %33 : vector<128x32xi32>
    %35 = arith.extui %34 : vector<128x32xi1> to vector<128x32xi32>
    %36 = arith.sitofp %35 : vector<128x32xi32> to vector<128x32xf32>
    %c128_i32_19 = arith.constant 128 : i32
    %37 = arith.muli %arg0, %c128_i32_19 : i32
    %38 = tpu.iota {dimensions = array<i32: 1>} : vector<1x128xi32>
    %39 = vector.broadcast %37 : i32 to vector<1x128xi32>
    %40 = arith.addi %39, %38 : vector<1x128xi32>
    %c16_i32_20 = arith.constant 16 : i32
    %41 = vector.broadcast %c16_i32_20 : i32 to vector<1x128xi32>
    %42 = arith.cmpi slt, %40, %41 : vector<1x128xi32>
    %43 = arith.extui %42 : vector<1x128xi1> to vector<1x128xi32>
    %44 = arith.sitofp %43 : vector<1x128xi32> to vector<1x128xf32>
    %45 = arith.mulf %21, %21 : vector<128x32xf32>
    %cst_21 = arith.constant 5.000000e-01 : f32
    %46 = vector.broadcast %cst_21 : f32 to vector<128x32xf32>
    %47 = arith.mulf %45, %46 : vector<128x32xf32>
    %cst_22 = arith.constant -1.6120857 : f32
    %48 = vector.broadcast %cst_22 : f32 to vector<128x32xf32>
    %49 = arith.subf %48, %47 : vector<128x32xf32>
    %50 = arith.mulf %21, %21 : vector<128x32xf32>
    %cst_23 = arith.constant 81377.3984 : f32
    %51 = vector.broadcast %cst_23 : f32 to vector<128x32xf32>
    %52 = arith.mulf %50, %51 : vector<128x32xf32>
    %cst_24 = arith.constant 4.38791418 : f32
    %53 = vector.broadcast %cst_24 : f32 to vector<128x32xf32>
    %54 = arith.subf %53, %52 : vector<128x32xf32>
    %55 = arith.maximumf %49, %54 : vector<128x32xf32>
    %56 = arith.subf %49, %55 : vector<128x32xf32>
    %57 = math.exp %56 : vector<128x32xf32>
    %58 = arith.subf %54, %55 : vector<128x32xf32>
    %59 = math.exp %58 : vector<128x32xf32>
    %60 = arith.addf %57, %59 : vector<128x32xf32>
    %61 = math.log %60 : vector<128x32xf32>
    %62 = arith.addf %55, %61 : vector<128x32xf32>
    %63 = arith.mulf %62, %36 : vector<128x32xf32>
    %64 = vector.shape_cast %63 : vector<128x32xf32> to vector<1x128x32xf32>
    %cst_25 = arith.constant dense<0.000000e+00> : vector<1xf32>
    %65 = vector.multi_reduction <add>, %64, %cst_25 [1, 2] : vector<1x128x32xf32> to vector<1xf32>
    %66 = vector.shape_cast %65 : vector<1xf32> to vector<1x1x1xf32>
    %67 = vector.extract %66[0, 0, 0] : f32 from vector<1x1x1xf32>
    %68 = arith.mulf %23, %23 : vector<1x128xf32>
    %cst_26 = arith.constant 5.000000e-01 : f32
    %69 = vector.broadcast %cst_26 : f32 to vector<1x128xf32>
    %70 = arith.mulf %68, %69 : vector<1x128xf32>
    %cst_27 = arith.constant -1.6120857 : f32
    %71 = vector.broadcast %cst_27 : f32 to vector<1x128xf32>
    %72 = arith.subf %71, %70 : vector<1x128xf32>
    %73 = arith.mulf %23, %23 : vector<1x128xf32>
    %cst_28 = arith.constant 81377.3984 : f32
    %74 = vector.broadcast %cst_28 : f32 to vector<1x128xf32>
    %75 = arith.mulf %73, %74 : vector<1x128xf32>
    %cst_29 = arith.constant 4.38791418 : f32
    %76 = vector.broadcast %cst_29 : f32 to vector<1x128xf32>
    %77 = arith.subf %76, %75 : vector<1x128xf32>
    %78 = arith.maximumf %72, %77 : vector<1x128xf32>
    %79 = arith.subf %72, %78 : vector<1x128xf32>
    %80 = math.exp %79 : vector<1x128xf32>
    %81 = arith.subf %77, %78 : vector<1x128xf32>
    %82 = math.exp %81 : vector<1x128xf32>
    %83 = arith.addf %80, %82 : vector<1x128xf32>
    %84 = math.log %83 : vector<1x128xf32>
    %85 = arith.addf %78, %84 : vector<1x128xf32>
    %86 = arith.mulf %85, %44 : vector<1x128xf32>
    %87 = vector.shape_cast %86 : vector<1x128xf32> to vector<1x1x128xf32>
    %cst_30 = arith.constant dense<0.000000e+00> : vector<1xf32>
    %88 = vector.multi_reduction <add>, %87, %cst_30 [1, 2] : vector<1x1x128xf32> to vector<1xf32>
    %89 = vector.shape_cast %88 : vector<1xf32> to vector<1x1x1xf32>
    %90 = vector.extract %89[0, 0, 0] : f32 from vector<1x1x1xf32>
    %91 = arith.addf %67, %90 : f32
    %cst_31 = arith.constant 5.000000e-01 : f32
    %92 = vector.broadcast %cst_31 : f32 to vector<128x32xf32>
    %93 = arith.mulf %92, %18 : vector<128x32xf32>
    %94 = arith.mulf %93, %18 : vector<128x32xf32>
    %cst_32 = arith.constant 5.000000e-01 : f32
    %95 = vector.broadcast %cst_32 : f32 to vector<1x128xf32>
    %96 = arith.mulf %95, %19 : vector<1x128xf32>
    %97 = arith.mulf %96, %19 : vector<1x128xf32>
    %98 = math.log %9 : vector<128x32xf32>
    %cst_33 = arith.constant -0.918938517 : f32
    %99 = vector.broadcast %cst_33 : f32 to vector<128x32xf32>
    %100 = arith.subf %99, %98 : vector<128x32xf32>
    %101 = arith.subf %100, %94 : vector<128x32xf32>
    %102 = arith.mulf %101, %36 : vector<128x32xf32>
    %103 = vector.shape_cast %102 : vector<128x32xf32> to vector<1x128x32xf32>
    %cst_34 = arith.constant dense<0.000000e+00> : vector<1xf32>
    %104 = vector.multi_reduction <add>, %103, %cst_34 [1, 2] : vector<1x128x32xf32> to vector<1xf32>
    %105 = vector.shape_cast %104 : vector<1xf32> to vector<1x1x1xf32>
    %106 = vector.extract %105[0, 0, 0] : f32 from vector<1x1x1xf32>
    %107 = math.log %17 : vector<1x128xf32>
    %cst_35 = arith.constant -0.918938517 : f32
    %108 = vector.broadcast %cst_35 : f32 to vector<1x128xf32>
    %109 = arith.subf %108, %107 : vector<1x128xf32>
    %110 = arith.subf %109, %97 : vector<1x128xf32>
    %111 = arith.mulf %110, %44 : vector<1x128xf32>
    %112 = vector.shape_cast %111 : vector<1x128xf32> to vector<1x1x128xf32>
    %cst_36 = arith.constant dense<0.000000e+00> : vector<1xf32>
    %113 = vector.multi_reduction <add>, %112, %cst_36 [1, 2] : vector<1x1x128xf32> to vector<1xf32>
    %114 = vector.shape_cast %113 : vector<1xf32> to vector<1x1x1xf32>
    %115 = vector.extract %114[0, 0, 0] : f32 from vector<1x1x1xf32>
    %116 = arith.addf %106, %115 : f32
    %c0_i32 = arith.constant 0 : i32
    %117 = arith.cmpi eq, %arg0, %c0_i32 : i32
    %118 = arith.extui %117 : i1 to i32
    %c0_i32_37 = arith.constant 0 : i32
    %119 = arith.cmpi ne, %118, %c0_i32_37 : i32
    scf.if %119 {
      %cst_46 = arith.constant 0.000000e+00 : f32
      %c0_47 = arith.constant 0 : index
      %c0_48 = arith.constant 0 : index
      %126 = memref.load %arg9[%c0_47, %c0_48] : memref<1x1xf32, #tpu.memory_space<smem>>
      memref.store %cst_46, %arg9[%c0_47, %c0_48] : memref<1x1xf32, #tpu.memory_space<smem>>
      %cst_49 = arith.constant 0.000000e+00 : f32
      %c0_50 = arith.constant 0 : index
      %c0_51 = arith.constant 0 : index
      %127 = memref.load %arg10[%c0_50, %c0_51] : memref<1x1xf32, #tpu.memory_space<smem>>
      memref.store %cst_49, %arg10[%c0_50, %c0_51] : memref<1x1xf32, #tpu.memory_space<smem>>
    } else {
    }
    %c0_38 = arith.constant 0 : index
    %c0_39 = arith.constant 0 : index
    %120 = memref.load %arg9[%c0_38, %c0_39] : memref<1x1xf32, #tpu.memory_space<smem>>
    %121 = arith.addf %120, %91 : f32
    %c0_40 = arith.constant 0 : index
    %c0_41 = arith.constant 0 : index
    %122 = memref.load %arg9[%c0_40, %c0_41] : memref<1x1xf32, #tpu.memory_space<smem>>
    memref.store %121, %arg9[%c0_40, %c0_41] : memref<1x1xf32, #tpu.memory_space<smem>>
    %c0_42 = arith.constant 0 : index
    %c0_43 = arith.constant 0 : index
    %123 = memref.load %arg10[%c0_42, %c0_43] : memref<1x1xf32, #tpu.memory_space<smem>>
    %124 = arith.addf %123, %116 : f32
    %c0_44 = arith.constant 0 : index
    %c0_45 = arith.constant 0 : index
    %125 = memref.load %arg10[%c0_44, %c0_45] : memref<1x1xf32, #tpu.memory_space<smem>>
    memref.store %124, %arg10[%c0_44, %c0_45] : memref<1x1xf32, #tpu.memory_space<smem>>
    return
  }
  func.func @transform_0(%arg0: i32) -> (i32, i32) {
    %c0_i32 = arith.constant 0 : i32
    %c0_i32_0 = arith.constant 0 : i32
    %c0_i32_1 = arith.constant 0 : i32
    return %c0_i32, %c0_i32_0 : i32, i32
  }
  func.func @transform_1(%arg0: i32) -> (i32, i32) {
    %c0_i32 = arith.constant 0 : i32
    %c0_i32_0 = arith.constant 0 : i32
    return %arg0, %c0_i32 : i32, i32
  }
  func.func @transform_2(%arg0: i32) -> (i32, i32) {
    %c0_i32 = arith.constant 0 : i32
    %c0_i32_0 = arith.constant 0 : i32
    return %arg0, %c0_i32 : i32, i32
  }
  func.func @transform_3(%arg0: i32) -> (i32, i32) {
    %c0_i32 = arith.constant 0 : i32
    %c0_i32_0 = arith.constant 0 : i32
    return %arg0, %c0_i32 : i32, i32
  }
  func.func @transform_4(%arg0: i32) -> (i32, i32) {
    %c0_i32 = arith.constant 0 : i32
    %c0_i32_0 = arith.constant 0 : i32
    return %c0_i32, %arg0 : i32, i32
  }
  func.func @transform_5(%arg0: i32) -> (i32, i32) {
    %c0_i32 = arith.constant 0 : i32
    %c0_i32_0 = arith.constant 0 : i32
    return %c0_i32, %arg0 : i32, i32
  }
  func.func @transform_6(%arg0: i32) -> (i32, i32) {
    %c0_i32 = arith.constant 0 : i32
    %c0_i32_0 = arith.constant 0 : i32
    return %c0_i32, %arg0 : i32, i32
  }
  func.func @transform_7(%arg0: i32) -> (i32, i32) {
    %c0_i32 = arith.constant 0 : i32
    %c0_i32_0 = arith.constant 0 : i32
    return %c0_i32, %arg0 : i32, i32
  }
  func.func @transform_8(%arg0: i32) -> (i32, i32) {
    %c0_i32 = arith.constant 0 : i32
    %c0_i32_0 = arith.constant 0 : i32
    %c0_i32_1 = arith.constant 0 : i32
    return %c0_i32, %c0_i32_0 : i32, i32
  }
  func.func @transform_9(%arg0: i32) -> (i32, i32) {
    %c0_i32 = arith.constant 0 : i32
    %c0_i32_0 = arith.constant 0 : i32
    %c0_i32_1 = arith.constant 0 : i32
    return %c0_i32, %c0_i32_0 : i32, i32
  }
}

</mosaic_0001>

<bundles_post_ra>
// kernel: tpu_custom_call.1
= control target key start
LH: loop header
LB: loop body
LE: loop exit
PB: predicated region body
PF: predicated region fallthrough
CT: control target
= control target key end

     0   :  { %15 = vsyncpa [#allocation3], 0  ;;  %s2448_s0 = inlined_call_operand.vmem [shape: f32[8,32], index: 0, kind: input, shape index: {}]   ;;  %s2449_s1 = inlined_call_operand.vmem [shape: f32[128,32], index: 1, kind: input, shape index: {}]   ;;  %s2450_s2 = inlined_call_operand.vmem [shape: f32[128,32], index: 2, kind: input, shape index: {}]   ;;  %s2451_s3 = inlined_call_operand.vmem [shape: f32[128,32], index: 3, kind: input, shape index: {}]   ;;  %s2452_s4 = inlined_call_operand.vmem [shape: f32[1,128], index: 4, kind: input, shape index: {}]   ;;  %s2453_s5 = inlined_call_operand.vmem [shape: f32[1,128], index: 5, kind: input, shape index: {}]   ;;  %s2454_s6 = inlined_call_operand.vmem [shape: f32[1,128], index: 6, kind: input, shape index: {}]   ;;  %s2455_s7 = inlined_call_operand.hbm [shape: f32[8,128], index: 7, kind: output, shape index: {0}]   ;;  %s2456_s8 = inlined_call_operand.hbm [shape: f32[1,1], index: 8, kind: output, shape index: {1}]   ;;  %s2457_s9 = inlined_call_operand.hbm [shape: f32[1,1], index: 9, kind: output, shape index: {2}]  }
   0x1   :  { %16 = vsyncpa [#allocation4], 0  ;;  %v1568_v0 = vld [vmem:[%s2450_s2] sm:$0xff]  ;;  %v1509_v1 = vmov 0.0|0.0   ;;  %v1574_v2 = vld [vmem:[%s2450_s2 + $0x8] sm:$0xff] }
   0x2   :  { %1210 = vmatprep.subr.bf16.mxu0 %v1509_v1  ;;  %v81_v3 = vmin.f32 %v1568_v0, 20.0  ;;  %v82_v4 = vmin.f32 %v1574_v2, 20.0  ;;  %v1581_v6 = vld [vmem:[%s2450_s2 + $0x10] sm:$0xff]  ;;  %v1586_v7 = vld [vmem:[%s2450_s2 + $0x18] sm:$0xff]  ;;  %v1593_v11 = vld [vmem:[%s2450_s2 + $0x20] sm:$0xff]  ;;  %vm65_vm1 = vcmp.gt.f32.partialorder %v1568_v0, 20.0 }
   0x3   :  { %v83_v9 = vmin.f32 %v1581_v6, 20.0  ;;  %v84_v10 = vmin.f32 %v1586_v7, 20.0  ;;  %v1598_v12 = vld [vmem:[%s2450_s2 + $0x28] sm:$0xff]  ;;  %v85_v15 = vmin.f32 %v1593_v11, 20.0  ;;  %v1605_v17 = vld [vmem:[%s2450_s2 + $0x30] sm:$0xff]  ;;  %v1610_v18 = vld [vmem:[%s2450_s2 + $0x38] sm:$0xff] }
   0x4   :  { %v97_v5 = vmul.f32 1.442695, %v81_v3  ;;  %v99_v8 = vmul.f32 1.442695, %v82_v4  ;;  %v86_v16 = vmin.f32 %v1598_v12, 20.0  ;;  %v1615_v19 = vld [vmem:[%s2451_s3] sm:$0xff] }
   0x5   :  { %v101_v13 = vmul.f32 1.442695, %v83_v9  ;;  %v103_v14 = vmul.f32 1.442695, %v84_v10  ;;  %v105_v20 = vmul.f32 1.442695, %v85_v15 }
   0x6   :  { %1257 = vpow2.f32 %v97_v5  ;;  %v915_v21 = vmul.f32 0.5, %v1615_v19  ;;  %v107_v22 = vmul.f32 1.442695, %v86_v16  ;;  %v1621_v23 = vld [vmem:[%s2450_s2 + $0x40] sm:$0xff]  ;;  %v1626_v24 = vld [vmem:[%s2451_s3 + $0x8] sm:$0xff]  ;;  %v87_v25 = vmin.f32 %v1605_v17, 20.0 }
   0x7   :  { %1259 = vpow2.f32 %v99_v8  ;;  %v88_v26 = vmin.f32 %v1610_v18, 20.0  ;;  %v916_v27 = vmul.f32 0.5, %v1626_v24  ;;  %v1634_v28 = vld [vmem:[%s2451_s3 + $0x10] sm:$0xff]  ;;  %v1639_v29 = vld [vmem:[%s2450_s2 + $0x48] sm:$0xff]  ;;  %v1644_v30 = vld [vmem:[%s2451_s3 + $0x18] sm:$0xff]  ;;  %v89_v33 = vmin.f32 %v1621_v23, 20.0 }
   0x8   :  { %1261 = vpow2.f32 %v101_v13  ;;  %v109_v31 = vmul.f32 1.442695, %v87_v25  ;;  %v1648_v34 = vmul.f32 %v915_v21, %v1615_v19  ;;  %v917_v35 = vmul.f32 0.5, %v1634_v28  ;;  %v1655_v37 = vld [vmem:[%s2451_s3 + $0x20] sm:$0xff]  ;;  %v1665_v49 = vld [vmem:[%s2451_s3 + $0x28] sm:$0xff] }
   0x9   :  { %1263 = vpow2.f32 %v103_v14  ;;  %v111_v32 = vmul.f32 1.442695, %v88_v26  ;;  %v918_v36 = vmul.f32 0.5, %v1644_v30  ;;  %v919_v39 = vmul.f32 0.5, %v1655_v37 }
   0xa   :  { %1265 = vpow2.f32 %v105_v20  ;;  %v90_v40 = vmin.f32 %v1639_v29, 20.0  ;;  %v113_v41 = vmul.f32 1.442695, %v89_v33  ;;  %v1660_v48 = vmul.f32 %v916_v27, %v1626_v24 }
   0xb   :  { %1267 = vpow2.f32 %v107_v22  ;;  %v1668_v50 = vmul.f32 %v917_v35, %v1634_v28  ;;  %v1671_v51 = vmul.f32 %v918_v36, %v1644_v30  ;;  %v1674_v52 = vmul.f32 0.5, %v1665_v49 }
   0xc   :  { %1269 = vpow2.f32 %v109_v31  ;;  %v1677_v56 = vmul.f32 %v919_v39, %v1655_v37  ;;  %v115_v61 = vmul.f32 1.442695, %v90_v40  ;;  %vm66_vm2 = vcmp.gt.f32.partialorder %v1574_v2, 20.0 }
   0xd   :  { %1271 = vpow2.f32 %v111_v32 }
   0xe   :  { %1273 = vpow2.f32 %v113_v41 }
  0x10   :  { %v1258_v38 = vpop.eup %1257 }
  0x11   :  { %v1260_v42 = vpop.eup %1259  ;;  %v129_v43 = vadd.f32 1.0, %v1258_v38  ;;  %v132_v44 = vmul.f32 -0.5, %v1258_v38  ;;  %v135_v45 = vand.u32 2147483647, %v1258_v38 }
  0x12   :  { %v138_v46 = vadd.f32 1.0, %v1260_v42  ;;  %v141_v47 = vmul.f32 -0.5, %v1260_v42  ;;  %v1262_v53 = vpop.eup %1261  ;;  %v144_v55 = vand.u32 2147483647, %v1260_v42 }
  0x13   :  { %1275 = vlog2.f32 %v129_v43  ;;  %v133_v54 = vadd.f32 1.0, %v132_v44  ;;  %v1264_v57 = vpop.eup %1263  ;;  %vm1679_vm0 = vcmp.lt.f32.partialorder %v135_v45, 0.0004427343  ;;  %v147_v59 = vadd.f32 1.0, %v1262_v53 }
  0x14   :  { %1277 = vlog2.f32 %v138_v46  ;;  %v150_v60 = vmul.f32 -0.5, %v1262_v53  ;;  %v1266_v62 = vpop.eup %1265  ;;  %v142_v63 = vadd.f32 1.0, %v141_v47  ;;  %v153_v3 = vand.u32 2147483647, %v1262_v53 }
  0x15   :  { %v156_v4 = vadd.f32 1.0, %v1264_v57  ;;  %v159_v5 = vmul.f32 -0.5, %v1264_v57  ;;  %v1268_v8 = vpop.eup %1267  ;;  %1279 = vlog2.f32 %v147_v59  ;;  %v162_v10 = vand.u32 2147483647, %v1264_v57 }
  0x16   :  { %v151_v9 = vadd.f32 1.0, %v150_v60  ;;  %v165_v13 = vadd.f32 1.0, %v1266_v62 }
  0x17   :  { %17 = vsyncpa [#allocation7], 0  ;;  %vm1685_vm3 = vcmp.lt.f32.partialorder %v144_v55, 0.0004427343  ;;  %1281 = vlog2.f32 %v156_v4  ;;  %v160_v15 = vadd.f32 1.0, %v159_v5  ;;  %v168_v16 = vmul.f32 -0.5, %v1266_v62  ;;  %v1689_v25 = vpop.eup %1269 }
  0x18   :  { %v134_v20 = vmul.f32 %v1258_v38, %v133_v54  ;;  %1283 = vlog2.f32 %v165_v13  ;;  %v171_v21 = vand.u32 2147483647, %v1266_v62  ;;  %v174_v22 = vadd.f32 1.0, %v1268_v8  ;;  %v1696_v33 = vpop.eup %1271  ;;  %v35_v36 = vld [vmem:[%s2449_s1 + $0x18] sm:$0xff] }
  0x19   :  { %v143_v26 = vmul.f32 %v1260_v42, %v142_v63  ;;  %vm67_vm4 = vcmp.gt.f32.partialorder %v1581_v6, 20.0  ;;  %vm1692_vm5 = vcmp.lt.f32.partialorder %v153_v3, 0.0004427343  ;;  %v169_v31 = vadd.f32 1.0, %v168_v16  ;;  %v1705_v40 = vpop.eup %1273 }
  0x1a   :  { %v177_v32 = vmul.f32 -0.5, %v1268_v8  ;;  %vm362_vm6 = vcmask 261120   ;;  %vm68_vm7 = vcmp.gt.f32.partialorder %v1586_v7, 20.0  ;;  %v152_v35 = vmul.f32 %v1262_v53, %v151_v9 }
  0x1b   :  { %vm1699_vm8 = vcmp.lt.f32.partialorder %v162_v10, 0.0004427343  ;;  %v183_v38 = vadd.f32 1.0, %v1689_v25  ;;  %v186_v39 = vmul.f32 -0.5, %v1689_v25  ;;  %v161_v41 = vmul.f32 %v1264_v57, %v160_v15  ;;  %v32_v10 = vld [vmem:[%s2449_s1] sm:$0xff]  ;;  %vm1765_vm13 = vmpackc.low %vm362_vm6, %vm362_vm6 }
  0x1c   :  { %1285 = vlog2.f32 %v174_v22  ;;  %v178_v42 = vadd.f32 1.0, %v177_v32  ;;  %v180_v43 = vand.u32 2147483647, %v1268_v8  ;;  %vm1707_vm9 = vcmp.lt.f32.partialorder %v171_v21, 0.0004427343 }
  0x1d   :  { %v1276_v44 = vpop.eup %1275  ;;  %v187_v46 = vadd.f32 1.0, %v186_v39  ;;  %v192_v47 = vadd.f32 1.0, %v1696_v33  ;;  %v195_v53 = vmul.f32 -0.5, %v1696_v33  ;;  %v1713_v59 = vmul.f32 %v1266_v62, %v169_v31 }
  0x1e   :  { %v1278_v54 = vpop.eup %1277  ;;  %v131_v55 = vmul.f32 0.6931472, %v1276_v44  ;;  %1287 = vlog2.f32 %v183_v38  ;;  %v189_v57 = vand.u32 2147483647, %v1689_v25  ;;  %vm69_vm10 = vcmp.gt.f32.partialorder %v1593_v11, 20.0 }
  0x1f   :  { %v140_v60 = vmul.f32 0.6931472, %v1278_v54  ;;  %v1717_v63 = vmul.f32 %v1268_v8, %v178_v42  ;;  %1289 = vlog2.f32 %v192_v47  ;;  %v196_v3 = vadd.f32 1.0, %v195_v53  ;;  %v1280_v62 = vpop.eup %1279 }
  0x20   :  { %v137_v4 = vsel %vm1679_vm0, %v134_v20, %v131_v55  ;;  %v1722_v5 = vmul.f32 %v1689_v25, %v187_v46  ;;  %v198_v9 = vand.u32 2147483647, %v1696_v33  ;;  %1291 = vpow2.f32 %v115_v61  ;;  %v33_v20 = vld [vmem:[%s2449_s1 + $0x8] sm:$0xff] }
  0x21   :  { %v146_v8 = vsel %vm1685_vm3, %v143_v26, %v140_v60  ;;  %v273_v13 = vsel %vm65_vm1, %v1568_v0, %v137_v4  ;;  %vm1733_vm11 = vcmp.lt.f32.partialorder %v180_v43, 0.0004427343  ;;  %v201_v15 = vadd.f32 1.0, %v1705_v40  ;;  %v1282_v16 = vpop.eup %1281 }
  0x22   :  { %v204_v61 = vmul.f32 -0.5, %v1705_v40  ;;  %v274_v14 = vsel %vm66_vm2, %v1574_v2, %v146_v8  ;;  %v321_v21 = vmul.f32 %v1615_v19, %v273_v13  ;;  %1293 = vlog2.f32 %v273_v13  ;;  %v1284_v22 = vpop.eup %1283  ;;  %v34_v19 = vld [vmem:[%s2449_s1 + $0x10] sm:$0xff] }
  0x23   :  { %v149_v0 = vmul.f32 0.6931472, %v1280_v62  ;;  %v322_v26 = vmul.f32 %v1626_v24, %v274_v14  ;;  %1295 = vlog2.f32 %v274_v14  ;;  %v158_v31 = vmul.f32 0.6931472, %v1282_v16 }
  0x24   :  { %v1748_v32 = vmul.f32 %v1696_v33, %v196_v3  ;;  %v337_v38 = vadd.f32 %v321_v21, %v32_v10  ;;  %v167_v42 = vmul.f32 0.6931472, %v1284_v22  ;;  %v1752_v43 = vadd.f32 1.0, %v204_v61 }
  0x25   :  { %v155_v39 = vsel %vm1692_vm5, %v152_v35, %v149_v0  ;;  %v338_v2 = vadd.f32 %v322_v26, %v33_v20  ;;  %v164_v24 = vsel %vm1699_vm8, %v161_v41, %v158_v31  ;;  %vm70_vm12 = vcmp.gt.f32.partialorder %v1598_v12, 20.0 }
  0x26   :  { %v275_v44 = vsel %vm67_vm4, %v1581_v6, %v155_v39  ;;  %1297 = vlog2.f32 %v201_v15  ;;  %v1286_v27 = vpop.eup %1285  ;;  %v574_v46 = vmul.f32 %v337_v38, %v337_v38  ;;  %v276_v41 = vsel %vm68_vm7, %v1586_v7, %v164_v24 }
  0x27   :  { %v323_v6 = vmul.f32 %v1634_v28, %v275_v44  ;;  %1299 = vlog2.f32 %v275_v44  ;;  %v1211_v47 = vpack.c.bf16 %v338_v2, %v337_v38  ;;  %v575_v53 = vmul.f32 %v338_v2, %v338_v2 }
  0x28   :  { %v324_v54 = vmul.f32 %v1644_v30, %v276_v41  ;;  %1301 = vlog2.f32 %v276_v41  ;;  %v1777_v55 = vpop.eup %1287  ;;  %v590_v60 = vmul.f32 0.5, %v574_v46  ;;  %v622_v3 = vmul.f32 81377.4, %v574_v46 }
  0x29   :  { %v339_v4 = vadd.f32 %v323_v6, %v34_v19  ;;  %v173_v62 = vsel %vm1707_vm9, %v1713_v59, %v167_v42  ;;  %v1782_v10 = vpop.eup %1289  ;;  %1213 = vmatpush3.bf16.xpose.msk.msra.mxu0 %vm1765_vm13, %v1211_v47  ;;  %v591_v7 = vmul.f32 0.5, %v575_v53  ;;  %v623_v28 = vmul.f32 81377.4, %v575_v53 }
  0x2a   :  { %v340_v8 = vadd.f32 %v324_v54, %v35_v36  ;;  %v176_v13 = vmul.f32 0.6931472, %v1286_v27  ;;  %v1786_v30 = vpop.eup %1291  ;;  %v606_v15 = vsub.f32 -1.6120857, %v590_v60  ;;  %v638_v61 = vsub.f32 4.387914, %v622_v3  ;;  %1214 = vmatprep.subr.bf16.mxu0 %v1509_v1 }
  0x2b   :  { %v576_v16 = vmul.f32 %v339_v4, %v339_v4  ;;  %v1792_v45 = vsel %vm69_vm10, %v1593_v11, %v173_v62  ;;  %v607_v59 = vsub.f32 -1.6120857, %v591_v7  ;;  %v639_v20 = vsub.f32 4.387914, %v623_v28 }
  0x2c   :  { %v1215_v14 = vpack.c.bf16 %v340_v8, %v339_v4  ;;  %v577_v21 = vmul.f32 %v340_v8, %v340_v8  ;;  %v1294_v0 = vpop.eup %1293  ;;  %v1794_v22 = vmax.f32 %v606_v15, %v638_v61  ;;  %v182_v38 = vsel %vm1733_vm11, %v1717_v63, %v176_v13  ;;  %v1873_v13 = vld [vmem:[%s2451_s3 + $0x30] sm:$0xff] }
  0x2d   :  { %v592_v26 = vmul.f32 0.5, %v576_v16  ;;  %v624_v31 = vmul.f32 81377.4, %v576_v16  ;;  %v1296_v39 = vpop.eup %1295  ;;  %v1799_v42 = vmax.f32 %v607_v59, %v639_v20  ;;  %v950_v2 = vmul.f32 0.6931472, %v1294_v0 }
  0x2e   :  { %v593_v19 = vmul.f32 0.5, %v577_v21  ;;  %v625_v11 = vmul.f32 81377.4, %v577_v21  ;;  %v670_v24 = vsub.f32 %v606_v15, %v1794_v22  ;;  %v718_v44 = vsub.f32 %v638_v61, %v1794_v22 }
  0x2f   :  { %v952_v27 = vmul.f32 0.6931472, %v1296_v39  ;;  %v608_v46 = vsub.f32 -1.6120857, %v592_v26  ;;  %v671_v41 = vsub.f32 %v607_v59, %v1799_v42  ;;  %v719_v6 = vsub.f32 %v639_v20, %v1799_v42  ;;  %v37_v39 = vld [vmem:[%s2449_s1 + $0x28] sm:$0xff] }
  0x30   :  { %v1803_v36 = vpop.eup %1297  ;;  %v981_v58 = vsub.f32 -0.9189385, %v950_v2  ;;  %v609_v63 = vsub.f32 -1.6120857, %v593_v19  ;;  %v686_v53 = vmul.f32 1.442695, %v670_v24  ;;  %v1810_v3 = vsel %vm70_vm12, %v1598_v12, %v182_v38 }
  0x31   :  { %v1300_v47 = vpop.eup %1299  ;;  %v734_v54 = vmul.f32 1.442695, %v718_v44  ;;  %v982_v60 = vsub.f32 -0.9189385, %v952_v27  ;;  %v688_v62 = vmul.f32 1.442695, %v671_v41  ;;  %1217 = vmatpush3.bf16.xpose.msk.msra.mxu0 %vm1765_vm13, %v1215_v14  ;;  %v326_v24 = vmul.f32 %v1665_v49, %v1810_v3 }
  0x32   :  { %v1302_v4 = vpop.eup %1301  ;;  %v736_v7 = vmul.f32 1.442695, %v719_v6  ;;  %v997_v28 = vsub.f32 %v981_v58, %v1648_v34  ;;  %v640_v8 = vsub.f32 4.387914, %v624_v31  ;;  %vm1817_vm14 = vcmp.lt.f32.partialorder %v189_v57, 0.0004427343  ;;  %1218 = vmatprep.subr.bf16.mxu0 %v1509_v1 }
  0x33   :  { %1303 = vpow2.f32 %v686_v53  ;;  %v998_v15 = vsub.f32 %v982_v60, %v1660_v48  ;;  %v641_v12 = vsub.f32 4.387914, %v625_v11  ;;  %v954_v61 = vmul.f32 0.6931472, %v1300_v47  ;;  %v36_v38 = vld [vmem:[%s2449_s1 + $0x20] sm:$0xff] }
  0x34   :  { %1305 = vpow2.f32 %v688_v62  ;;  %v1029_v34 = vsel %vm362_vm6, %v997_v28, 0.0  ;;  %v1824_v16 = vmax.f32 %v608_v46, %v640_v8  ;;  %v956_v59 = vmul.f32 0.6931472, %v1302_v4 }
  0x35   :  { %vm1828_vm15 = vcmp.lt.f32.partialorder %v198_v9, 0.0004427343  ;;  %1307 = vpow2.f32 %v734_v54  ;;  %v1030_v57 = vsel %vm362_vm6, %v998_v15, 0.0  ;;  %v1833_v48 = vmax.f32 %v609_v63, %v641_v12 }
  0x36   :  { %v983_v20 = vsub.f32 -0.9189385, %v954_v61  ;;  %vm71_vm0 = vcmp.gt.f32.partialorder %v1605_v17, 20.0  ;;  %1309 = vpow2.f32 %v736_v7  ;;  %v1031_v14 = vadd.f32 %v1030_v57, %v1029_v34 }
  0x37   :  { %v672_v21 = vsub.f32 %v608_v46, %v1824_v16  ;;  %v720_v0 = vsub.f32 %v640_v8, %v1824_v16  ;;  %vm72_vm1 = vcmp.gt.f32.partialorder %v1610_v18, 20.0  ;;  %v673_v33 = vsub.f32 %v609_v63, %v1833_v48 }
  0x38   :  { %v721_v9 = vsub.f32 %v641_v12, %v1833_v48  ;;  %v984_v26 = vsub.f32 -0.9189385, %v956_v59  ;;  %v999_v31 = vsub.f32 %v983_v20, %v1668_v50  ;;  %v325_v11 = vmul.f32 %v1655_v37, %v1792_v45 }
  0x39   :  { %v690_v2 = vmul.f32 1.442695, %v672_v21  ;;  %v738_v19 = vmul.f32 1.442695, %v720_v0  ;;  %v692_v44 = vmul.f32 1.442695, %v673_v33  ;;  %v342_v6 = vadd.f32 %v326_v24, %v37_v39 }
  0x3a   :  { %v740_v27 = vmul.f32 1.442695, %v721_v9  ;;  %v1000_v50 = vsub.f32 %v984_v26, %v1671_v51  ;;  %v1015_v46 = vmul.f32 0.0, %v999_v31  ;;  %v341_v41 = vadd.f32 %v325_v11, %v36_v38  ;;  %v38_v21 = vld [vmem:[%s2449_s1 + $0x30] sm:$0xff]  ;;  %v39_v0 = vld [vmem:[%s2449_s1 + $0x38] sm:$0xff] }
  0x3b   :  { %1311 = vpow2.f32 %v690_v2  ;;  %v185_v58 = vmul.f32 0.6931472, %v1777_v55  ;;  %v194_v53 = vmul.f32 0.6931472, %v1782_v10  ;;  %v579_v62 = vmul.f32 %v342_v6, %v342_v6 }
  0x3c   :  { %1313 = vpow2.f32 %v692_v44  ;;  %v1016_v63 = vmul.f32 0.0, %v1000_v50  ;;  %v1032_v47 = vsel %vm362_vm6, %v1015_v46, 0.0  ;;  %v1219_v54 = vpack.c.bf16 %v342_v6, %v341_v41 }
  0x3d   :  { %1315 = vpow2.f32 %v738_v19  ;;  %v1033_v37 = vadd.f32 %v1032_v47, %v1031_v14  ;;  %v578_v60 = vmul.f32 %v341_v41, %v341_v41  ;;  %v1304_v4 = vpop.eup %1303  ;;  %v191_v7 = vsel %vm1817_vm14, %v1722_v5, %v185_v58 }
  0x3e   :  { %1317 = vpow2.f32 %v740_v27  ;;  %v1034_v51 = vsel %vm362_vm6, %v1016_v63, 0.0  ;;  %v1306_v55 = vpop.eup %1305  ;;  %1221 = vmatpush3.bf16.xpose.msk.msra.mxu0 %vm1765_vm13, %v1219_v54  ;;  %v595_v12 = vmul.f32 0.5, %v579_v62  ;;  %v627_v61 = vmul.f32 81377.4, %v579_v62 }
  0x3f   :  { %v1860_v28 = vadd.f32 %v1034_v51, %v1033_v37  ;;  %v594_v10 = vmul.f32 0.5, %v578_v60  ;;  %v626_v8 = vmul.f32 81377.4, %v578_v60  ;;  %1319 = vlog2.f32 %v1792_v45  ;;  %v1308_v15 = vpop.eup %1307  ;;  %1222 = vmatprep.subr.bf16.mxu0 %v1509_v1  ;;  %v1878_v45 = vld [vmem:[%s2451_s3 + $0x38] sm:$0xff] }
  0x40   :  { %1321 = vlog2.f32 %v1810_v3  ;;  %v200_v5 = vsel %vm1828_vm15, %v1748_v32, %v194_v53  ;;  %v1310_v34 = vpop.eup %1309  ;;  %v766_v59 = vadd.f32 %v1308_v15, %v1304_v4  ;;  %v279_v20 = vsel %vm71_vm0, %v1605_v17, %v191_v7 }
  0x41   :  { %v610_v57 = vsub.f32 -1.6120857, %v594_v10  ;;  %v642_v3 = vsub.f32 4.387914, %v626_v8  ;;  %v767_v25 = vadd.f32 %v1310_v34, %v1306_v55  ;;  %v611_v32 = vsub.f32 -1.6120857, %v595_v12 }
  0x42   :  { %v643_v14 = vsub.f32 4.387914, %v627_v61  ;;  %v1892_v33 = vsel %vm72_vm1, %v1610_v18, %v200_v5  ;;  %1323 = vlog2.f32 %v766_v59  ;;  %v327_v17 = vmul.f32 %v1873_v13, %v279_v20 }
  0x43   :  { %v1894_v9 = vmax.f32 %v610_v57, %v642_v3  ;;  %v328_v26 = vmul.f32 %v1878_v45, %v1892_v33  ;;  %1325 = vlog2.f32 %v767_v25  ;;  %v936_v38 = vmul.f32 %v1674_v52, %v1665_v49 }
  0x44   :  { %v1899_v31 = vmax.f32 %v611_v32, %v643_v14  ;;  %v1905_v39 = vmul.f32 %v1705_v40, %v1752_v43  ;;  %v343_v11 = vadd.f32 %v327_v17, %v38_v21  ;;  %1327 = vlog2.f32 %v279_v20 }
  0x45   :  { %v1312_v18 = vpop.eup %1311  ;;  %v674_v2 = vsub.f32 %v610_v57, %v1894_v9  ;;  %v722_v19 = vsub.f32 %v642_v3, %v1894_v9  ;;  %v344_v24 = vadd.f32 %v328_v26, %v39_v0  ;;  %v207_v46 = vand.u32 2147483647, %v1705_v40 }
  0x46   :  { %v1314_v44 = vpop.eup %1313  ;;  %v675_v27 = vsub.f32 %v611_v32, %v1899_v31  ;;  %v723_v50 = vsub.f32 %v643_v14, %v1899_v31  ;;  %v580_v6 = vmul.f32 %v343_v11, %v343_v11  ;;  %v203_v3 = vmul.f32 0.6931472, %v1803_v36 }
  0x47   :  { %v1316_v49 = vpop.eup %1315  ;;  %v694_v52 = vmul.f32 1.442695, %v674_v2  ;;  %v742_v41 = vmul.f32 1.442695, %v722_v19  ;;  %v1223_v43 = vpack.c.bf16 %v344_v24, %v343_v11  ;;  %v581_v37 = vmul.f32 %v344_v24, %v344_v24 }
  0x48   :  { %v1318_v58 = vpop.eup %1317  ;;  %v768_v63 = vadd.f32 %v1316_v49, %v1312_v18  ;;  %v696_v47 = vmul.f32 1.442695, %v675_v27  ;;  %v744_v53 = vmul.f32 1.442695, %v723_v50  ;;  %v596_v4 = vmul.f32 0.5, %v580_v6 }
  0x49   :  { %v1320_v54 = vpop.eup %1319  ;;  %v769_v60 = vadd.f32 %v1318_v58, %v1314_v44  ;;  %1329 = vpow2.f32 %v694_v52  ;;  %1225 = vmatpush3.bf16.xpose.msk.msra.mxu0 %vm1765_vm13, %v1223_v43  ;;  %v628_v51 = vmul.f32 81377.4, %v580_v6  ;;  %v597_v7 = vmul.f32 0.5, %v581_v37 }
  0x4a   :  { %v1322_v62 = vpop.eup %1321  ;;  %1331 = vlog2.f32 %v768_v63  ;;  %v958_v40 = vmul.f32 0.6931472, %v1320_v54  ;;  %v629_v55 = vmul.f32 81377.4, %v581_v37  ;;  %1226 = vmatprep.subr.bf16.mxu0 %v1509_v1  ;;  %v612_v8 = vsub.f32 -1.6120857, %v596_v4 }
  0x4b   :  { %1333 = vlog2.f32 %v769_v60  ;;  %v960_v10 = vmul.f32 0.6931472, %v1322_v62  ;;  %v644_v15 = vsub.f32 4.387914, %v628_v51  ;;  %v613_v61 = vsub.f32 -1.6120857, %v597_v7 }
  0x4c   :  { %1335 = vpow2.f32 %v696_v47  ;;  %v985_v12 = vsub.f32 -0.9189385, %v958_v40  ;;  %v645_v5 = vsub.f32 4.387914, %v629_v55  ;;  %v1324_v34 = vpop.eup %1323  ;;  %vm1926_vm2 = vcmp.lt.f32.partialorder %v207_v46, 0.0004427343 }
  0x4d   :  { %1337 = vpow2.f32 %v742_v41  ;;  %v986_v59 = vsub.f32 -0.9189385, %v960_v10  ;;  %v1915_v57 = vmax.f32 %v612_v8, %v644_v15  ;;  %v1326_v20 = vpop.eup %1325  ;;  %v783_v25 = vmul.f32 0.6931472, %v1324_v34 }
  0x4e   :  { %1339 = vpow2.f32 %v744_v53  ;;  %v1001_v32 = vsub.f32 %v985_v12, %v1677_v56  ;;  %v1919_v14 = vmax.f32 %v613_v61, %v645_v5  ;;  %v785_v21 = vmul.f32 0.6931472, %v1326_v20  ;;  %v1328_v18 = vpop.eup %1327  ;;  %v1984_v12 = vld [vmem:[%s2450_s2 + $0x58] sm:$0xff] }
  0x4f   :  { %v1921_v0 = vsub.f32 %v986_v59, %v936_v38  ;;  %v676_v17 = vsub.f32 %v612_v8, %v1915_v57  ;;  %v724_v26 = vsub.f32 %v644_v15, %v1915_v57  ;;  %v814_v2 = vadd.f32 %v783_v25, %v1794_v22  ;;  %v1993_v59 = vld [vmem:[%s2450_s2 + $0x60] sm:$0xff] }
  0x50   :  { %v1017_v19 = vmul.f32 0.0, %v1001_v32  ;;  %v815_v11 = vadd.f32 %v785_v21, %v1799_v42  ;;  %v677_v44 = vsub.f32 %v613_v61, %v1919_v14  ;;  %vm73_vm3 = vcmp.gt.f32.partialorder %v1621_v23, 20.0 }
  0x51   :  { %v698_v56 = vmul.f32 1.442695, %v676_v17  ;;  %v846_v24 = vsel %vm362_vm6, %v814_v2, 0.0  ;;  %v746_v27 = vmul.f32 1.442695, %v724_v26  ;;  %v209_v42 = vsel %vm1926_vm2, %v1905_v39, %v203_v3  ;;  %v1949_v39 = vld [vmem:[%s2451_s3 + $0x40] sm:$0xff] }
  0x52   :  { %v1036_v38 = vsel %vm362_vm6, %v1017_v19, 0.0  ;;  %v847_v49 = vsel %vm362_vm6, %v815_v11, 0.0  ;;  %v921_v41 = vmul.f32 0.5, %v1873_v13  ;;  %v922_v43 = vmul.f32 0.5, %v1878_v45  ;;  %v1998_v3 = vld [vmem:[%s2450_s2 + $0x68] sm:$0xff] }
  0x53   :  { %v1330_v50 = vpop.eup %1329  ;;  %v1936_v22 = vadd.f32 %v1036_v38, %v1860_v28  ;;  %v848_v52 = vadd.f32 %v847_v49, %v846_v24  ;;  %v210_v6 = vadd.f32 1.0, %v1786_v30  ;;  %1341 = vpow2.f32 %v698_v56 }
  0x54   :  { %v1332_v46 = vpop.eup %1331  ;;  %v700_v28 = vmul.f32 1.442695, %v677_v44  ;;  %1343 = vpow2.f32 %v746_v27  ;;  %v281_v53 = vsel %vm73_vm3, %v1621_v23, %v209_v42  ;;  %v725_v60 = vsub.f32 %v645_v5, %v1919_v14  ;;  %v40_v23 = vld [vmem:[%s2449_s1 + $0x40] sm:$0xff]  ;;  %v2012_v27 = vld [vmem:[%s2450_s2 + $0x70] sm:$0xff] }
  0x55   :  { %v1334_v58 = vpop.eup %1333  ;;  %v787_v63 = vmul.f32 0.6931472, %v1332_v46  ;;  %1345 = vlog2.f32 %v1892_v33  ;;  %v1955_v62 = vmul.f32 %v921_v41, %v1873_v13  ;;  %v1958_v40 = vmul.f32 %v922_v43, %v1878_v45  ;;  %v1967_v33 = vld [vmem:[%s2451_s3 + $0x48] sm:$0xff]  ;;  %v1973_v45 = vld [vmem:[%s2450_s2 + $0x50] sm:$0xff] }
  0x56   :  { %v1336_v47 = vpop.eup %1335  ;;  %1347 = vlog2.f32 %v210_v6  ;;  %v329_v13 = vmul.f32 %v1949_v39, %v281_v53  ;;  %v962_v10 = vmul.f32 0.6931472, %v1328_v18  ;;  %v1976_v8 = vmul.f32 0.5, %v1949_v39 }
  0x57   :  { %v1338_v37 = vpop.eup %1337  ;;  %v816_v54 = vadd.f32 %v787_v63, %v1824_v16  ;;  %v213_v16 = vmul.f32 -0.5, %v1786_v30  ;;  %1349 = vpow2.f32 %v700_v28  ;;  %v1979_v15 = vmul.f32 0.5, %v1967_v33 }
  0x58   :  { %v1340_v4 = vpop.eup %1339  ;;  %v770_v51 = vadd.f32 %v1338_v37, %v1330_v50  ;;  %v748_v5 = vmul.f32 1.442695, %v725_v60  ;;  %vm74_vm4 = vcmp.gt.f32.partialorder %v1639_v29, 20.0  ;;  %v1988_v34 = vadd.f32 %v329_v13, %v40_v23 }
  0x59   :  { %v832_v7 = vmul.f32 0.0, %v816_v54  ;;  %v771_v55 = vadd.f32 %v1340_v4, %v1336_v47  ;;  %v789_v20 = vmul.f32 0.6931472, %v1334_v58  ;;  %v91_v32 = vmin.f32 %v1973_v45, 20.0 }
  0x5a   :  { %1351 = vlog2.f32 %v770_v51  ;;  %v214_v21 = vadd.f32 1.0, %v213_v16  ;;  %v216_v17 = vand.u32 2147483647, %v1786_v30  ;;  %v582_v26 = vmul.f32 %v1988_v34, %v1988_v34 }
  0x5b   :  { %v849_v61 = vsel %vm362_vm6, %v832_v7, 0.0  ;;  %1353 = vlog2.f32 %v771_v55  ;;  %v92_v18 = vmin.f32 %v1984_v12, 20.0  ;;  %v987_v2 = vsub.f32 -0.9189385, %v962_v10 }
  0x5c   :  { %v2000_v25 = vadd.f32 %v849_v61, %v848_v52  ;;  %v117_v19 = vmul.f32 1.442695, %v91_v32  ;;  %v93_v36 = vmin.f32 %v1993_v59, 20.0  ;;  %v94_v11 = vmin.f32 %v1998_v3, 20.0 }
  0x5d   :  { %v1342_v56 = vpop.eup %1341  ;;  %v598_v24 = vmul.f32 0.5, %v582_v26  ;;  %v630_v38 = vmul.f32 81377.4, %v582_v26  ;;  %1355 = vlog2.f32 %v281_v53  ;;  %v119_v44 = vmul.f32 1.442695, %v92_v18 }
  0x5e   :  { %v1344_v50 = vpop.eup %1343  ;;  %v817_v49 = vadd.f32 %v789_v20, %v1833_v48  ;;  %1357 = vpow2.f32 %v117_v19  ;;  %v121_v42 = vmul.f32 1.442695, %v93_v36  ;;  %v123_v46 = vmul.f32 1.442695, %v94_v11 }
  0x5f   :  { %v1346_v52 = vpop.eup %1345  ;;  %v215_v41 = vmul.f32 %v1786_v30, %v214_v21  ;;  %v614_v43 = vsub.f32 -1.6120857, %v598_v24  ;;  %v646_v6 = vsub.f32 4.387914, %v630_v38  ;;  %1359 = vpow2.f32 %v119_v44  ;;  %v2026_v30 = vld [vmem:[%s2450_s2 + $0x78] sm:$0xff] }
  0x60   :  { %v1348_v58 = vpop.eup %1347  ;;  %1361 = vpow2.f32 %v748_v5  ;;  %v964_v63 = vmul.f32 0.6931472, %v1346_v52  ;;  %vm2016_vm5 = vcmp.lt.f32.partialorder %v216_v17, 0.0004427343  ;;  %v95_v28 = vmin.f32 %v2012_v27, 20.0  ;;  %v41_v5 = vld [vmem:[%s2449_s1 + $0x48] sm:$0xff] }
  0x61   :  { %v772_v53 = vadd.f32 %v1344_v50, %v1342_v56  ;;  %v212_v48 = vmul.f32 0.6931472, %v1348_v58  ;;  %v2021_v37 = vmax.f32 %v614_v43, %v646_v6  ;;  %1363 = vpow2.f32 %v121_v42  ;;  %v2028_v54 = vpop.eup %1349 }
  0x62   :  { %v1018_v60 = vmul.f32 0.0, %v1921_v0  ;;  %v988_v4 = vsub.f32 -0.9189385, %v964_v63  ;;  %1365 = vpow2.f32 %v123_v46  ;;  %v125_v51 = vmul.f32 1.442695, %v95_v28 }
  0x63   :  { %v833_v7 = vmul.f32 0.0, %v817_v49  ;;  %v1003_v55 = vsub.f32 %v987_v2, %v1955_v62  ;;  %v218_v16 = vsel %vm2016_vm5, %v215_v41, %v212_v48  ;;  %v678_v13 = vsub.f32 %v614_v43, %v2021_v37 }
  0x64   :  { %v1352_v23 = vpop.eup %1351  ;;  %v1004_v61 = vsub.f32 %v988_v4, %v1958_v40  ;;  %v282_v0 = vsel %vm74_vm4, %v1639_v29, %v218_v16  ;;  %v96_v20 = vmin.f32 %v2026_v30, 20.0  ;;  %1367 = vpow2.f32 %v125_v51  ;;  %v2109_v4 = vld [vmem:[%s2451_s3 + $0x68] sm:$0xff] }
  0x65   :  { %v1354_v10 = vpop.eup %1353  ;;  %1369 = vlog2.f32 %v772_v53  ;;  %v330_v62 = vmul.f32 %v1967_v33, %v282_v0  ;;  %v726_v32 = vsub.f32 %v646_v6, %v2021_v37  ;;  %v2047_v21 = vmul.f32 %v1976_v8, %v1949_v39  ;;  %v2061_v39 = vld [vmem:[%s2451_s3 + $0x50] sm:$0xff]  ;;  %v2066_v8 = vld [vmem:[%s2451_s3 + $0x58] sm:$0xff] }
  0x66   :  { %v791_v40 = vmul.f32 0.6931472, %v1352_v23  ;;  %v2050_v17 = vsel %vm362_vm6, %v1018_v60, 0.0  ;;  %v702_v26 = vmul.f32 1.442695, %v678_v13  ;;  %1371 = vlog2.f32 %v282_v0 }
  0x67   :  { %v1356_v18 = vpop.eup %1355  ;;  %v793_v29 = vmul.f32 0.6931472, %v1354_v10  ;;  %v2052_v2 = vmul.f32 0.0, %v1003_v55  ;;  %v346_v19 = vadd.f32 %v330_v62, %v41_v5  ;;  %v2056_v36 = vmul.f32 %v1979_v15, %v1967_v33 }
  0x68   :  { %v2068_v11 = vpop.eup %1357  ;;  %v2071_v56 = vsel %vm362_vm6, %v833_v7, 0.0  ;;  %v2074_v24 = vmul.f32 0.5, %v2061_v39  ;;  %v127_v33 = vmul.f32 1.442695, %v96_v20  ;;  %v2077_v15 = vmul.f32 0.5, %v2066_v8 }
  0x69   :  { %v2079_v38 = vpop.eup %1359  ;;  %v1227_v44 = vpack.c.bf16 %v346_v19, %v1988_v34  ;;  %v583_v50 = vmul.f32 %v346_v19, %v346_v19  ;;  %v750_v49 = vmul.f32 1.442695, %v726_v32  ;;  %v219_v42 = vadd.f32 1.0, %v2068_v11 }
  0x6a   :  { %v2083_v46 = vpop.eup %1361  ;;  %v2086_v52 = vadd.f32 %v791_v40, %v1894_v9  ;;  %1373 = vpow2.f32 %v702_v26  ;;  %v2088_v41 = vmul.f32 0.6931472, %v1356_v18  ;;  %v228_v43 = vadd.f32 1.0, %v2079_v38 }
  0x6b   :  { %v1364_v6 = vpop.eup %1363  ;;  %v2092_v58 = vadd.f32 %v793_v29, %v1899_v31  ;;  %1229 = vmatpush3.bf16.xpose.msk.msra.mxu0 %vm1765_vm13, %v1227_v44  ;;  %v599_v34 = vmul.f32 0.5, %v583_v50  ;;  %v631_v63 = vmul.f32 81377.4, %v583_v50  ;;  %1375 = vlog2.f32 %v219_v42  ;;  %v2104_v31 = vld [vmem:[%s2451_s3 + $0x60] sm:$0xff] }
  0x6c   :  { %v1366_v47 = vpop.eup %1365  ;;  %v2096_v28 = vmul.f32 0.0, %v1004_v61  ;;  %1230 = vmatprep.subr.bf16.mxu0 %v1509_v1  ;;  %v222_v9 = vmul.f32 -0.5, %v2068_v11  ;;  %1377 = vlog2.f32 %v228_v43  ;;  %v231_v53 = vmul.f32 -0.5, %v2079_v38 }
  0x6d   :  { %v615_v48 = vsub.f32 -1.6120857, %v599_v34  ;;  %v647_v60 = vsub.f32 4.387914, %v631_v63  ;;  %1379 = vpow2.f32 %v750_v49  ;;  %v2112_v51 = vmul.f32 0.5, %v2104_v31 }
  0x6e   :  { %v2114_v23 = vpop.eup %1367  ;;  %v989_v7 = vsub.f32 -0.9189385, %v2088_v41  ;;  %vm75_vm7 = vcmp.gt.f32.partialorder %v1973_v45, 20.0  ;;  %v237_v55 = vadd.f32 1.0, %v1364_v6  ;;  %v240_v16 = vmul.f32 -0.5, %v1364_v6  ;;  %v44_v41 = vld [vmem:[%s2449_s1 + $0x60] sm:$0xff] }
  0x6f   :  { %v2119_v13 = vmul.f32 0.5, %v2109_v4  ;;  %v1370_v10 = vpop.eup %1369  ;;  %v2121_v61 = vmax.f32 %v615_v48, %v647_v60  ;;  %vm76_vm8 = vcmp.gt.f32.partialorder %v1984_v12, 20.0  ;;  %v225_v5 = vand.u32 2147483647, %v2068_v11 }
  0x70   :  { %v246_v0 = vadd.f32 1.0, %v1366_v47  ;;  %v249_v20 = vmul.f32 -0.5, %v1366_v47  ;;  %v1372_v62 = vpop.eup %1371  ;;  %v223_v32 = vadd.f32 1.0, %v222_v9  ;;  %v232_v40 = vadd.f32 1.0, %v231_v53 }
  0x71   :  { %v234_v26 = vand.u32 2147483647, %v2079_v38  ;;  %1381 = vlog2.f32 %v237_v55  ;;  %v679_v18 = vsub.f32 %v615_v48, %v2121_v61  ;;  %v727_v29 = vsub.f32 %v647_v60, %v2121_v61 }
  0x72   :  { %v243_v19 = vand.u32 2147483647, %v1364_v6  ;;  %v255_v44 = vadd.f32 1.0, %v2114_v23  ;;  %v2129_v50 = vmul.f32 0.6931472, %v1370_v10  ;;  %v241_v49 = vadd.f32 1.0, %v240_v16 }
  0x73   :  { %1383 = vlog2.f32 %v246_v0  ;;  %v252_v42 = vand.u32 2147483647, %v1366_v47  ;;  %v2131_v43 = vmul.f32 0.6931472, %v1372_v62  ;;  %vm2133_vm9 = vcmp.lt.f32.partialorder %v225_v5, 0.0004427343 }
  0x74   :  { %vm77_vm10 = vcmp.gt.f32.partialorder %v1993_v59, 20.0  ;;  %v250_v63 = vadd.f32 1.0, %v249_v20  ;;  %1385 = vpow2.f32 %v127_v33  ;;  %v2138_v9 = vpop.eup %1373  ;;  %v704_v53 = vmul.f32 1.442695, %v679_v18 }
  0x75   :  { %v224_v48 = vmul.f32 %v2068_v11, %v223_v32  ;;  %vm2141_vm11 = vcmp.lt.f32.partialorder %v234_v26, 0.0004427343  ;;  %v258_v55 = vmul.f32 -0.5, %v2114_v23  ;;  %v1376_v16 = vpop.eup %1375  ;;  %v752_v10 = vmul.f32 1.442695, %v727_v29  ;;  %v2155_v11 = vld [vmem:[%s2451_s3 + $0x70] sm:$0xff] }
  0x76   :  { %v233_v5 = vmul.f32 %v2079_v38, %v232_v40  ;;  %vm78_vm12 = vcmp.gt.f32.partialorder %v1998_v3, 20.0  ;;  %vm2148_vm14 = vcmp.lt.f32.partialorder %v243_v19, 0.0004427343  ;;  %1387 = vlog2.f32 %v255_v44  ;;  %v1378_v33 = vpop.eup %1377  ;;  %v2168_v44 = vld [vmem:[%s2451_s3 + $0x78] sm:$0xff] }
  0x77   :  { %v221_v20 = vmul.f32 0.6931472, %v1376_v16  ;;  %v242_v62 = vmul.f32 %v1364_v6, %v241_v49  ;;  %vm2157_vm15 = vcmp.lt.f32.partialorder %v252_v42, 0.0004427343  ;;  %v261_v38 = vand.u32 2147483647, %v2114_v23  ;;  %v2162_v40 = vpop.eup %1379 }
  0x78   :  { %v990_v26 = vsub.f32 -0.9189385, %v2131_v43  ;;  %v230_v18 = vmul.f32 0.6931472, %v1378_v33  ;;  %v251_v29 = vmul.f32 %v1366_v47, %v250_v63  ;;  %v259_v19 = vadd.f32 1.0, %v258_v55  ;;  %v42_v47 = vld [vmem:[%s2449_s1 + $0x50] sm:$0xff] }
  0x79   :  { %1389 = vpow2.f32 %v704_v53  ;;  %v227_v6 = vsel %vm2133_vm9, %v224_v48, %v221_v20  ;;  %v2173_v49 = vmul.f32 0.5, %v2155_v11  ;;  %v2176_v42 = vmul.f32 0.5, %v2168_v44  ;;  %v43_v55 = vld [vmem:[%s2449_s1 + $0x58] sm:$0xff] }
  0x7a   :  { %1391 = vpow2.f32 %v752_v10  ;;  %v236_v63 = vsel %vm2141_vm11, %v233_v5, %v230_v18  ;;  %v283_v53 = vsel %vm75_vm7, %v1973_v45, %v227_v6  ;;  %v2188_v34 = vmul.f32 %v2074_v24, %v2061_v39 }
  0x7b   :  { %v1382_v48 = vpop.eup %1381  ;;  %v284_v16 = vsel %vm76_vm8, %v1984_v12, %v236_v63  ;;  %v331_v60 = vmul.f32 %v2061_v39, %v283_v53  ;;  %vm2197_vm0 = vcmp.lt.f32.partialorder %v261_v38, 0.0004427343  ;;  %v1039_v45 = vadd.f32 %v2050_v17, %v1936_v22 }
  0x7c   :  { %v332_v24 = vmul.f32 %v2066_v8, %v284_v16  ;;  %1393 = vlog2.f32 %v283_v53  ;;  %v239_v5 = vmul.f32 0.6931472, %v1382_v48  ;;  %v2205_v33 = vmul.f32 %v2114_v23, %v259_v19 }
  0x7d   :  { %v1384_v20 = vpop.eup %1383  ;;  %v347_v18 = vadd.f32 %v331_v60, %v42_v47  ;;  %1395 = vlog2.f32 %v284_v16  ;;  %v1005_v12 = vsub.f32 %v989_v7, %v2047_v21  ;;  %v1040_v39 = vsel %vm362_vm6, %v2052_v2, 0.0  ;;  %v45_v16 = vld [vmem:[%s2449_s1 + $0x68] sm:$0xff] }
  0x7e   :  { %v2212_v38 = vpop.eup %1385  ;;  %v348_v22 = vadd.f32 %v332_v24, %v43_v55  ;;  %v245_v17 = vsel %vm2148_vm14, %v242_v62, %v239_v5  ;;  %v248_v6 = vmul.f32 0.6931472, %v1384_v20  ;;  %vm79_vm1 = vcmp.gt.f32.partialorder %v2012_v27, 20.0 }
  0x7f   :  { %v2217_v23 = vadd.f32 %v1040_v39, %v1039_v45  ;;  %v584_v19 = vmul.f32 %v347_v18, %v347_v18  ;;  %v285_v21 = vsel %vm77_vm10, %v1993_v59, %v245_v17  ;;  %v264_v2 = vadd.f32 1.0, %v2212_v38 }
  0x80   :  { %v267_v7 = vmul.f32 -0.5, %v2212_v38  ;;  %v1388_v0 = vpop.eup %1387  ;;  %v1231_v62 = vpack.c.bf16 %v348_v22, %v347_v18  ;;  %v585_v47 = vmul.f32 %v348_v22, %v348_v22  ;;  %v254_v63 = vsel %vm2157_vm15, %v251_v29, %v248_v6 }
  0x81   :  { %v333_v53 = vmul.f32 %v2104_v31, %v285_v21  ;;  %v600_v48 = vmul.f32 0.5, %v584_v19  ;;  %v632_v55 = vmul.f32 81377.4, %v584_v19  ;;  %v2236_v59 = vsel %vm78_vm12, %v1998_v3, %v254_v63 }
  0x82   :  { %1397 = vlog2.f32 %v285_v21  ;;  %1233 = vmatpush3.bf16.xpose.msk.msra.mxu0 %vm1765_vm13, %v1231_v62  ;;  %v601_v60 = vmul.f32 0.5, %v585_v47  ;;  %v633_v32 = vmul.f32 81377.4, %v585_v47  ;;  %v334_v29 = vmul.f32 %v2109_v4, %v2236_v59 }
  0x83   :  { %v349_v45 = vadd.f32 %v333_v53, %v44_v41  ;;  %v2242_v24 = vpop.eup %1389  ;;  %v616_v5 = vsub.f32 -1.6120857, %v600_v48  ;;  %v648_v20 = vsub.f32 4.387914, %v632_v55  ;;  %1234 = vmatprep.subr.bf16.mxu0 %v1509_v1  ;;  %v257_v18 = vmul.f32 0.6931472, %v1388_v0 }
  0x84   :  { %1399 = vlog2.f32 %v264_v2  ;;  %v2245_v3 = vpop.eup %1391  ;;  %v617_v39 = vsub.f32 -1.6120857, %v601_v60  ;;  %v649_v22 = vsub.f32 4.387914, %v633_v32  ;;  %v350_v17 = vadd.f32 %v334_v29, %v45_v16 }
  0x85   :  { %v1006_v6 = vsub.f32 %v990_v26, %v2056_v36  ;;  %v2250_v19 = vmax.f32 %v616_v5, %v648_v20  ;;  %v586_v41 = vmul.f32 %v349_v45, %v349_v45  ;;  %v942_v21 = vmul.f32 %v2077_v15, %v2066_v8 }
  0x86   :  { %v943_v62 = vmul.f32 %v2112_v51, %v2104_v31  ;;  %v1394_v0 = vpop.eup %1393  ;;  %v2256_v2 = vmax.f32 %v617_v39, %v649_v22  ;;  %v1235_v47 = vpack.c.bf16 %v350_v17, %v349_v45  ;;  %vm80_vm2 = vcmp.gt.f32.partialorder %v2026_v30, 20.0 }
  0x87   :  { %v263_v43 = vsel %vm2197_vm0, %v2205_v33, %v257_v18  ;;  %v2264_v36 = vmul.f32 %v2119_v13, %v2109_v4  ;;  %v1396_v26 = vpop.eup %1395  ;;  %v680_v8 = vsub.f32 %v616_v5, %v2250_v19  ;;  %v268_v15 = vadd.f32 1.0, %v267_v7 }
  0x88   :  { %v2269_v31 = vmul.f32 %v2173_v49, %v2155_v11  ;;  %v2273_v51 = vmul.f32 %v2176_v42, %v2168_v44  ;;  %v681_v63 = vsub.f32 %v617_v39, %v2256_v2  ;;  %v270_v10 = vand.u32 2147483647, %v2212_v38 }
  0x89   :  { %v1021_v33 = vmul.f32 0.0, %v1005_v12  ;;  %v1022_v53 = vmul.f32 0.0, %v1006_v6  ;;  %v587_v4 = vmul.f32 %v350_v17, %v350_v17  ;;  %v2277_v13 = vmul.f32 0.5, %v586_v41 }
  0x8a   :  { %v287_v7 = vsel %vm79_vm1, %v2012_v27, %v263_v43  ;;  %v1042_v49 = vsel %vm362_vm6, %v2096_v28, 0.0  ;;  %v706_v48 = vmul.f32 1.442695, %v680_v8  ;;  %v728_v42 = vsub.f32 %v648_v20, %v2250_v19  ;;  %1237 = vmatpush3.bf16.xpose.msk.msra.mxu0 %vm1765_vm13, %v1235_v47  ;;  %v46_v27 = vld [vmem:[%s2449_s1 + $0x70] sm:$0xff] }
  0x8b   :  { %v2287_v55 = vmul.f32 81377.4, %v586_v41  ;;  %v335_v12 = vmul.f32 %v2155_v11, %v287_v7  ;;  %v729_v60 = vsub.f32 %v649_v22, %v2256_v2  ;;  %1238 = vmatprep.subr.bf16.mxu0 %v1509_v1  ;;  %v269_v28 = vmul.f32 %v2212_v38, %v268_v15  ;;  %v47_v15 = vld [vmem:[%s2449_s1 + $0x78] sm:$0xff] }
  0x8c   :  { %v1398_v16 = vpop.eup %1397  ;;  %v970_v32 = vmul.f32 0.6931472, %v1394_v0  ;;  %v972_v29 = vmul.f32 0.6931472, %v1396_v26  ;;  %v708_v45 = vmul.f32 1.442695, %v681_v63  ;;  %v1043_v11 = vadd.f32 %v1042_v49, %v2217_v23 }
  0x8d   :  { %vm2296_vm3 = vcmp.lt.f32.partialorder %v270_v10, 0.0004427343  ;;  %v974_v20 = vmul.f32 0.6931472, %v1398_v16  ;;  %v2301_v39 = vmul.f32 0.5, %v587_v4  ;;  %v1044_v17 = vsel %vm362_vm6, %v1021_v33, 0.0 }
  0x8e   :  { %v1400_v18 = vpop.eup %1399  ;;  %v991_v1 = vsub.f32 -0.9189385, %v970_v32  ;;  %v992_v22 = vsub.f32 -0.9189385, %v972_v29  ;;  %1401 = vpow2.f32 %v706_v48  ;;  %v351_v38 = vadd.f32 %v335_v12, %v46_v27 }
  0x8f   :  { %v266_v6 = vmul.f32 0.6931472, %v1400_v18  ;;  %v993_v41 = vsub.f32 -0.9189385, %v974_v20  ;;  %1403 = vlog2.f32 %v2236_v59  ;;  %v1045_v43 = vadd.f32 %v1044_v17, %v1043_v11 }
  0x90   :  { %v1007_v0 = vsub.f32 %v991_v1, %v2188_v34  ;;  %v1008_v47 = vsub.f32 %v992_v22, %v942_v21  ;;  %1405 = vlog2.f32 %v287_v7  ;;  %v1046_v8 = vsel %vm362_vm6, %v1022_v53, 0.0 }
  0x91   :  { %v272_v23 = vsel %vm2296_vm3, %v269_v28, %v266_v6  ;;  %v1009_v26 = vsub.f32 %v993_v41, %v943_v62  ;;  %v1047_v34 = vadd.f32 %v1046_v8, %v1045_v43  ;;  %v754_v21 = vmul.f32 1.442695, %v728_v42  ;;  %v2319_v62 = vld [vmem:[%s2453_s5] sm:$0x1] }
  0x92   :  { %v288_v63 = vsel %vm80_vm2, %v2026_v30, %v272_v23  ;;  %v1023_v59 = vmul.f32 0.0, %v1007_v0  ;;  %v1024_v10 = vmul.f32 0.0, %v1008_v47  ;;  %v756_v33 = vmul.f32 1.442695, %v729_v60 }
  0x93   :  { %v336_v49 = vmul.f32 %v2168_v44, %v288_v63  ;;  %1407 = vlog2.f32 %v288_v63  ;;  %v588_v53 = vmul.f32 %v351_v38, %v351_v38  ;;  %v1025_v12 = vmul.f32 0.0, %v1009_v26 }
  0x94   :  { %v1048_v7 = vsel %vm362_vm6, %v1023_v59, 0.0  ;;  %v1050_v30 = vsel %vm362_vm6, %v1024_v10, 0.0  ;;  %vm1510_vm4 = vmmov 0   ;;  %v1511_v27 = vmov 0.0  }
  0x95   :  { %v352_v48 = vadd.f32 %v336_v49, %v47_v15  ;;  %v1049_v16 = vadd.f32 %v1048_v7, %v1047_v34  ;;  %1207 = vmatprep.mubr.msk.f32.mxu0 %vm1510_vm4, %v1511_v27  ;;  %1409 = vpow2.f32 %v708_v45  ;;  %v618_v44 = vsub.f32 -1.6120857, %v2277_v13 }
  0x96   :  { %v635_v42 = vmul.f32 81377.4, %v587_v4  ;;  %v291_v60 = vmin.f32 %v2319_v62, 20.0  ;;  %1411 = vpow2.f32 %v754_v21  ;;  %v650_v28 = vsub.f32 4.387914, %v2287_v55 }
  0x97   :  { %v1239_v32 = vpack.c.bf16 %v352_v48, %v351_v38  ;;  %v589_v29 = vmul.f32 %v352_v48, %v352_v48  ;;  %1413 = vpow2.f32 %v756_v33  ;;  %v1051_v5 = vadd.f32 %v1050_v30, %v1049_v16 }
  0x98   :  { %v292_v20 = vmul.f32 1.442695, %v291_v60  ;;  %v604_v11 = vmul.f32 0.5, %v588_v53  ;;  %v2327_v18 = vpop.eup %1401  ;;  %v1052_v45 = vsel %vm362_vm6, %v1025_v12, 0.0  ;;  %v619_v4 = vsub.f32 -1.6120857, %v2301_v39 }
  0x99   :  { %1241 = vmatpush3.bf16.xpose.msk.msra.mxu0 %vm1765_vm13, %v1239_v32  ;;  %v605_v13 = vmul.f32 0.5, %v589_v29  ;;  %v636_v1 = vmul.f32 81377.4, %v588_v53  ;;  %v1404_v22 = vpop.eup %1403  ;;  %v637_v17 = vmul.f32 81377.4, %v589_v29  ;;  %v2333_v43 = vmax.f32 %v618_v44, %v650_v28  ;;  %v355_v39 = vld [vmem:[%s2448_s0] sm:$0xff] }
  0x9a   :  { %1415 = vpow2.f32 %v292_v20  ;;  %v620_v55 = vsub.f32 -1.6120857, %v604_v11  ;;  %v651_v6 = vsub.f32 4.387914, %v635_v42  ;;  %v1406_v38 = vpop.eup %1405  ;;  %v976_v41 = vmul.f32 0.6931472, %v1404_v22 }
  0x9b   :  { %v621_v0 = vsub.f32 -1.6120857, %v605_v13  ;;  %v652_v47 = vsub.f32 4.387914, %v636_v1  ;;  %v978_v23 = vmul.f32 0.6931472, %v1406_v38  ;;  %v1053_v35 = vadd.f32 %v1052_v45, %v1051_v5 }
  0x9c   :  { %v653_v26 = vsub.f32 4.387914, %v637_v17  ;;  %v2335_v8 = vmax.f32 %v619_v4, %v651_v6  ;;  %v994_v63 = vsub.f32 -0.9189385, %v976_v41  ;;  %v682_v10 = vsub.f32 %v618_v44, %v2333_v43 }
  0x9d   :  { %v1408_v15 = vpop.eup %1407  ;;  %v2340_v59 = vmax.f32 %v620_v55, %v652_v47  ;;  %v730_v34 = vsub.f32 %v650_v28, %v2333_v43  ;;  %v995_v33 = vsub.f32 -0.9189385, %v978_v23  ;;  %v834_v38 = vmul.f32 0.0, %v2086_v52 }
  0x9e   :  { %v980_v21 = vmul.f32 0.6931472, %v1408_v15  ;;  %v2344_v49 = vmax.f32 %v621_v0, %v653_v26  ;;  %v683_v53 = vsub.f32 %v619_v4, %v2335_v8  ;;  %v1010_v7 = vsub.f32 %v994_v63, %v2264_v36 }
  0x9f   :  { %v684_v48 = vsub.f32 %v620_v55, %v2340_v59  ;;  %v710_v12 = vmul.f32 1.442695, %v682_v10  ;;  %v731_v16 = vsub.f32 %v651_v6, %v2335_v8  ;;  %v1410_v30 = vpop.eup %1409  ;;  %v1011_v60 = vsub.f32 %v995_v33, %v2269_v31 }
  0xa0   :  { %v996_v42 = vsub.f32 -0.9189385, %v980_v21  ;;  %1208 = vmatmul.mubr.msk.f32.vlgmr.msra.gmra.mrb[0].mxu0 %vm362_vm6, %v355_v39  ;;  %v685_v44 = vsub.f32 %v621_v0, %v2344_v49  ;;  %v712_v28 = vmul.f32 1.442695, %v683_v53  ;;  %v1412_v32 = vpop.eup %1411  ;;  %v1026_v29 = vmul.f32 0.0, %v1010_v7 }
  0xa1   :  { %1417 = vpow2.f32 %v710_v12  ;;  %v714_v5 = vmul.f32 1.442695, %v684_v48  ;;  %v732_v36 = vsub.f32 %v652_v47, %v2340_v59  ;;  %v1414_v20 = vpop.eup %1413  ;;  %v1027_v45 = vmul.f32 0.0, %v1011_v60 }
  0xa2   :  { %v1012_v11 = vsub.f32 %v996_v42, %v2273_v51  ;;  %1419 = vpow2.f32 %v712_v28  ;;  %v716_v13 = vmul.f32 1.442695, %v685_v44  ;;  %v1054_v4 = vsel %vm362_vm6, %v1026_v29, 0.0 }
  0xa3   :  { %1421 = vpow2.f32 %v714_v5  ;;  %v733_v31 = vsub.f32 %v653_v26, %v2344_v49  ;;  %v758_v1 = vmul.f32 1.442695, %v730_v34  ;;  %v1055_v17 = vadd.f32 %v1054_v4, %v1053_v35 }
  0xa4   :  { %v1416_v22 = vpop.eup %1415  ;;  %v1028_v55 = vmul.f32 0.0, %v1012_v11  ;;  %v1056_v6 = vsel %vm362_vm6, %v1027_v45, 0.0  ;;  %1423 = vpow2.f32 %v716_v13  ;;  %v820_v51 = vadd.f32 %v2129_v50, %v1915_v57  ;;  %v48_v13 = vld [vmem:[%s2452_s4] sm:$0x1]  ;;  %s1512_s4 = smov [#allocation2]  }
  0xa5   :  { %v294_v41 = vadd.f32 1.0, %v1416_v22  ;;  %1425 = vpow2.f32 %v758_v1  ;;  %v1057_v0 = vadd.f32 %v1056_v6, %v1055_v17  ;;  %v760_v23 = vmul.f32 1.442695, %v731_v16 }
  0xa6   :  { %v1058_v47 = vsel %vm362_vm6, %v1028_v55, 0.0  ;;  %v762_v15 = vmul.f32 1.442695, %v732_v36  ;;  %v835_v26 = vmul.f32 0.0, %v2092_v58  ;;  %v764_v63 = vmul.f32 1.442695, %v733_v31 }
  0xa7   :  { %1427 = vlog2.f32 %v294_v41  ;;  %v773_v35 = vadd.f32 %v2083_v46, %v2028_v54  ;;  %v1059_v39 = vadd.f32 %v1058_v47, %v1057_v0  ;;  %v297_v10 = vmul.f32 -0.5, %v1416_v22 }
  0xa8   :  { %1429 = vpow2.f32 %v760_v23  ;;  %v774_v57 = vadd.f32 %v2162_v40, %v2138_v9  ;;  %v775_v52 = vadd.f32 %v2245_v3, %v2242_v24  ;;  %v776_v50 = vadd.f32 %v1412_v32, %v2327_v18  ;;  %v320_v32 = vld [vmem:[%s2454_s6] sm:$0x1]  ;;  %s1107_s6 = sshll.u32 %s1512_s4, 4  ;;  %s1108_s6 = int_to_ptr.vmem [resolvable:$true] %s1107_s6 }
  0xa9   :  { %1431 = vpow2.f32 %v762_v15  ;;  %1060 = vadd.xlane.f32.xlu1 %v1059_v39  ;;  %v836_v58 = vmul.f32 0.0, %v820_v51  ;;  %v852_v34 = vadd.f32 %v2071_v56, %v2000_v25  ;;  %v853_v54 = vsel %vm362_vm6, %v834_v38, 0.0  ;;  %s1461_s23 = scalar_lea.vmem %s1108_s6, 128  ;;  %p1466_p1 = scmp.lt.s32.totalorder %s1108_s6, %s1108_s6 }
  0xaa   :  { %1433 = vpow2.f32 %v764_v63  ;;  %v777_v21 = vadd.f32 %v1414_v20, %v1410_v30  ;;  %v855_v33 = vsel %vm362_vm6, %v835_v26, 0.0  ;;  %v298_v40 = vadd.f32 1.0, %v297_v10  ;;  %p1462_p0 = scmp.ne.s32.totalorder %s1108_s6, %s1461_s23  ;;  %p1467_p2 = scmp.lt.s32.totalorder %s1461_s23, %s1461_s23 }
  0xab   :  { %v1418_v46 = vpop.eup %1417  ;;  %1435 = vlog2.f32 %v773_v35  ;;  %v854_v53 = vadd.f32 %v853_v54, %v852_v34  ;;  %v300_v3 = vand.u32 2147483647, %v1416_v22  ;;  %v857_v18 = vsel %vm362_vm6, %v836_v58, 0.0 }
  0xac   :  { %v1420_v9 = vpop.eup %1419  ;;  %1437 = vlog2.f32 %v774_v57  ;;  %v299_v56 = vmul.f32 %v1416_v22, %v298_v40  ;;  %vm290_vm5 = vcmp.gt.f32.partialorder %v2319_v62, 20.0  ;;  %v357_v28 = vlaneseq  ;;  %p1468_p3 = por %p1467_p2, %p1466_p1 }
  0xad   :  { %v1422_v24 = vpop.eup %1421  ;;  %1439 = vlog2.f32 %v775_v52  ;;  %v856_v48 = vadd.f32 %v855_v33, %v854_v53  ;;  %vm301_vm13 = vcmp.lt.f32.partialorder %v300_v3, 0.0004427343  ;;  %v947_v39 = vmul.f32 0.5, %v320_v32 }
  0xae   :  { %v1424_v7 = vpop.eup %1423  ;;  %1441 = vlog2.f32 %v776_v50  ;;  %v569_v17 = vand.u32 127, %v357_v28  ;;  %vm903_vm8 = vcmask 1040384   ;;  %p1469_p4 = pnand %p1468_p3, %p1462_p0 }
  0xaf   :  { %v1426_v25 = vpop.eup %1425  ;;  %1443 = vlog2.f32 %v777_v21  ;;  %v858_v16 = vadd.f32 %v857_v18, %v856_v48 }
  0xb0   :  { %v778_v12 = vadd.f32 %v1426_v25, %v1418_v46  ;;  %vm571_vm7 = vcmp.lt.s32.totalorder %v569_v17, 16 }
  0xb1   :  { %v1428_v30 = vpop.eup %1427 }
  0xb2   :  { %v1430_v42 = vpop.eup %1429  ;;  %v296_v60 = vmul.f32 0.6931472, %v1428_v30  ;;  %1445 = vlog2.f32 %v778_v12 }
  0xb3   :  { %v1432_v44 = vpop.eup %1431  ;;  %v779_v29 = vadd.f32 %v1430_v42, %v1420_v9 }
  0xb4   :  { %v1434_v5 = vpop.eup %1433  ;;  %v302_v36 = vsel %vm301_vm13, %v299_v56, %v296_v60  ;;  %v780_v20 = vadd.f32 %v1432_v44, %v1422_v24  ;;  %v948_v56 = vmul.f32 %v947_v39, %v320_v32 }
  0xb5   :  { %v1436_v11 = vpop.eup %1435  ;;  %v303_v45 = vsel %vm290_vm5, %v2319_v62, %v302_v36  ;;  %v781_v4 = vadd.f32 %v1434_v5, %v1424_v7  ;;  %1447 = vlog2.f32 %v779_v29 }
  0xb6   :  { %v1438_v31 = vpop.eup %1437  ;;  %v353_v1 = vmul.f32 %v320_v32, %v303_v45  ;;  %1449 = vlog2.f32 %v303_v45  ;;  %v797_v22 = vmul.f32 0.6931472, %v1436_v11 }
  0xb7   :  { %v1440_v55 = vpop.eup %1439  ;;  %v799_v6 = vmul.f32 0.6931472, %v1438_v31  ;;  %1451 = vlog2.f32 %v780_v20 }
  0xb8   :  { %v1442_v38 = vpop.eup %1441  ;;  %v2384_v51 = vadd.f32 %v353_v1, %v48_v13  ;;  %v801_v41 = vmul.f32 0.6931472, %v1440_v55  ;;  %1453 = vlog2.f32 %v781_v4  ;;  %v821_v62 = vadd.f32 %v797_v22, %v1919_v14 }
  0xb9   :  { %v1444_v0 = vpop.eup %1443  ;;  %v803_v47 = vmul.f32 0.6931472, %v1442_v38  ;;  %v822_v23 = vadd.f32 %v799_v6, %v2021_v37 }
  0xba   :  { %v805_v15 = vmul.f32 0.6931472, %v1444_v0  ;;  %v823_v26 = vadd.f32 %v801_v41, %v2121_v61  ;;  %v837_v63 = vmul.f32 0.0, %v821_v62  ;;  %v886_v35 = vmul.f32 %v2384_v51, %v2384_v51 }
  0xbb   :  { %v824_v10 = vadd.f32 %v803_v47, %v2250_v19  ;;  %v838_v57 = vmul.f32 0.0, %v822_v23 }
  0xbc   :  { %v1446_v52 = vpop.eup %1445  ;;  %v825_v50 = vadd.f32 %v805_v15, %v2256_v2  ;;  %v839_v14 = vmul.f32 0.0, %v823_v26  ;;  %v859_v58 = vsel %vm362_vm6, %v837_v63, 0.0  ;;  %v887_v34 = vmul.f32 0.5, %v886_v35 }
  0xbd   :  { %v807_v37 = vmul.f32 0.6931472, %v1446_v52  ;;  %v840_v54 = vmul.f32 0.0, %v824_v10  ;;  %v860_v46 = vadd.f32 %v859_v58, %v858_v16  ;;  %v861_v61 = vsel %vm362_vm6, %v838_v57, 0.0 }
  0xbe   :  { %v841_v21 = vmul.f32 0.0, %v825_v50  ;;  %v863_v33 = vsel %vm362_vm6, %v839_v14, 0.0  ;;  %v888_v9 = vsub.f32 -1.6120857, %v887_v34  ;;  %v889_v40 = vmul.f32 81377.4, %v886_v35 }
  0xbf   :  { %v1448_v53 = vpop.eup %1447  ;;  %v826_v19 = vadd.f32 %v807_v37, %v2333_v43  ;;  %v862_v24 = vadd.f32 %v861_v61, %v860_v46  ;;  %v1157_v2 = vsel %vm571_vm7, 1.0, %v1511_v27  ;;  %v865_v7 = vsel %vm362_vm6, %v840_v54, 0.0 }
  0xc0   :  { %v1450_v3 = vpop.eup %1449  ;;  %v809_v18 = vmul.f32 0.6931472, %v1448_v53  ;;  %v890_v48 = vsub.f32 4.387914, %v889_v40  ;;  %v867_v43 = vsel %vm362_vm6, %v841_v21, 0.0  ;;  %v358_v21 = vshrl.u32 %v357_v28, 7 }
  0xc1   :  { %v1452_v25 = vpop.eup %1451  ;;  %v1070_v12 = vmul.f32 0.6931472, %v1450_v3  ;;  %v842_v16 = vmul.f32 0.0, %v826_v19  ;;  %v864_v30 = vadd.f32 %v863_v33, %v862_v24 }
  0xc2   :  { %v1454_v42 = vpop.eup %1453  ;;  %v811_v60 = vmul.f32 0.6931472, %v1452_v25  ;;  %v827_v44 = vadd.f32 %v809_v18, %v2335_v8  ;;  %v891_v29 = vmax.f32 %v888_v9, %v890_v48 }
  0xc3   :  { %v1071_v5 = vsub.f32 -0.9189385, %v1070_v12  ;;  %v813_v36 = vmul.f32 0.6931472, %v1454_v42  ;;  %v866_v20 = vadd.f32 %v865_v7, %v864_v30  ;;  %v869_v27 = vsel %vm362_vm6, %v842_v16, 0.0 }
  0xc4   :  { %v828_v11 = vadd.f32 %v811_v60, %v2340_v59  ;;  %v843_v45 = vmul.f32 0.0, %v827_v44  ;;  %v892_v13 = vsub.f32 %v888_v9, %v891_v29  ;;  %v895_v32 = vsub.f32 %v890_v48, %v891_v29 }
  0xc5   :  { %v1072_v4 = vsub.f32 %v1071_v5, %v948_v56  ;;  %v829_v31 = vadd.f32 %v813_v36, %v2344_v49  ;;  %v868_v1 = vadd.f32 %v867_v43, %v866_v20  ;;  %v359_v9 = vsub.s32 0, %v358_v21 }
  0xc6   :  { %v844_v22 = vmul.f32 0.0, %v828_v11  ;;  %v871_v8 = vsel %vm362_vm6, %v843_v45, 0.0  ;;  %v893_v55 = vmul.f32 1.442695, %v892_v13  ;;  %v896_v17 = vmul.f32 1.442695, %v895_v32 }
  0xc7   :  { %v1073_v6 = vmul.f32 %v1157_v2, %v1072_v4  ;;  %v845_v38 = vmul.f32 0.0, %v829_v31  ;;  %v870_v41 = vadd.f32 %v869_v27, %v868_v1  ;;  %v360_v19 = vrot.slane %v2384_v51, %v359_v9 }
  0xc8   :  { %v873_v62 = vsel %vm362_vm6, %v844_v22, 0.0  ;;  %1455 = vpow2.f32 %v893_v55 }
  0xc9   :  { %v1074_v59 = vsel %vm903_vm8, %v1073_v6, 0.0  ;;  %v872_v0 = vadd.f32 %v871_v8, %v870_v41  ;;  %1457 = vpow2.f32 %v896_v17  ;;  %v875_v47 = vsel %vm362_vm6, %v845_v38, 0.0 }
  0xca   :  { %1075 = vadd.xlane.f32.xlu1 %v1074_v59 }
  0xcb   :  { %v874_v49 = vadd.f32 %v873_v62, %v872_v0 }
  0xcd   :  { %v876_v23 = vadd.f32 %v875_v47, %v874_v49 }
  0xcf   :  { %877 = vadd.xlane.f32.xlu0 %v876_v23 }
  0xd2   :  { %v1456_v15 = vpop.eup %1455 }
  0xd3   :  { %v1458_v26 = vpop.eup %1457 }
  0xd4   :  { %v898_v63 = vadd.f32 %v1458_v26, %v1456_v15 }
  0xd6   :  { %1459 = vlog2.f32 %v898_v63 }
  0xe0   :  { %v1460_v35 = vpop.eup %1459 }
  0xe1   :  { %v900_v39 = vmul.f32 0.6931472, %v1460_v35 }
  0xe3   :  { %v901_v10 = vadd.f32 %v900_v39, %v891_v29 }
  0xe5   :  { %v902_v57 = vmul.f32 %v1157_v2, %v901_v10 }
  0xe7   :  { %v904_v52 = vsel %vm903_vm8, %v902_v57, 0.0 }
  0xe8   :  { %905 = vadd.xlane.f32.xlu0 %v904_v52 }
 0x136   :  { %v1061_v54 = vpop.xlane.xlu1 %1060 }
 0x137   :  { %v1062_v40 = vrot.slane %v1061_v54, 4 }
 0x139   :  { %v1063_v24 = vadd.f32 %v1062_v40, %v1061_v54 }
 0x13b   :  { %v1064_v48 = vrot.slane %v1063_v24, 2 }
 0x157   :  { %v1076_v33 = vpop.xlane.xlu1 %1075 }
 0x158   :  { %v1077_v53 = vrot.slane %v1076_v33, 4 }
 0x15a   :  { %v1078_v3 = vadd.f32 %v1077_v53, %v1076_v33 }
 0x15c   :  { %v878_v50 = vpop.xlane.xlu0 %877  ;;  %v1079_v56 = vrot.slane %v1078_v3, 2 }
 0x15d   :  { %v879_v14 = vrot.slane %v878_v50, 4 }
 0x15f   :  { %v880_v58 = vadd.f32 %v879_v14, %v878_v50 }
 0x161   :  { %v881_v34 = vrot.slane %v880_v58, 2 }
 0x163   :  { %v882_v37 = vadd.f32 %v881_v34, %v880_v58 }
 0x165   :  { %v883_v46 = vrot.slane %v882_v37, 1 }
 0x167   :  { %v884_v61 = vadd.f32 %v883_v46, %v882_v37 }
 0x169   :  { %1242 = vpush %v884_v61 }
 0x173   :  { %v480_v2 = vpop.f32.mrb[0].mxu0 }
 0x174   :  { %v481_v18 = vadd.f32 %v480_v2, %v360_v19  ;;  %v1209_v7 = vpop.f32.mrb[1].mxu0 }
 0x175   :  { %v906_v25 = vpop.xlane.xlu0 %905 }
 0x176   :  { %v907_v12 = vrot.slane %v906_v25, 4  ;;  %484 = vst [vmem:[#allocation2] sm:$0xff] %v481_v18 }
 0x177   :  { %1472 = shalt.err (!%p1469_p4)
}
 0x178   :  { %s1473_s26 = scalar_lea.hbm %s2455_s7, 128 }
 0x179   :  { %p1474_p5 = scmp.ne.s32.totalorder %s2455_s7, %s1473_s26  ;;  %p1477_p6 = scmp.lt.u32.totalorder %s1473_s26, %s2455_s7 }
 0x17b   :  { %p1479_p7 = pnand %p1477_p6, %p1474_p5 }
 0x17d   :  { %1482 = shalt.err (!%p1479_p7)
}
 0x17e   :  { %1110 = dma.vmem_to_hbm [thread:$0]  %s1108_s6, 128, %s2455_s7, [#allocation3]   ;;  %v908_v28 = vadd.f32 %v907_v12, %v906_v25  ;;  %v1065_v51 = vadd.f32 %v1064_v48, %v1063_v24  ;;  %v1080_v16 = vadd.f32 %v1079_v56, %v1078_v3 }
 0x17f   :  { %s1483_s17 = scalar_lea.hbm %s2456_s8, 16 }
 0x180   :  { %v909_v30 = vrot.slane %v908_v28, 2  ;;  %v1066_v60 = vrot.slane %v1065_v51, 1  ;;  %v1081_v43 = vrot.slane %v1080_v16, 1  ;;  %p1484_p8 = scmp.ne.s32.totalorder %s2456_s8, %s1483_s17  ;;  %p1487_p9 = scmp.lt.u32.totalorder %s1483_s17, %s2456_s8 }
 0x182   :  { %v910_v42 = vadd.f32 %v909_v30, %v908_v28  ;;  %v1067_v5 = vadd.f32 %v1066_v60, %v1065_v51  ;;  %v1082_v36 = vadd.f32 %v1081_v43, %v1080_v16  ;;  %p1489_p10 = pnand %p1487_p9, %p1484_p8 }
 0x184   :  { %v911_v44 = vrot.slane %v910_v42, 1 }
 0x186   :  { %v912_v29 = vadd.f32 %v911_v44, %v910_v42 }
 0x188   :  { %1244 = vpush %v912_v29 }
 0x189   :  { %1246 = vpush %v1067_v5 }
 0x18a   :  { %1248 = vpush %v1082_v36 }
 0x19a   :  { %s1243_s11 = spop %1242 }
 0x1b9   :  { %s1245_s12 = spop %1244 }
 0x1ba   :  { %s914_s13 = sadd.f32 %s1245_s12, %s1243_s11  ;;  %s1247_s14 = spop %1246 }
 0x1bb   :  { %s1249_s15 = spop %1248 }
 0x1bc   :  { %s1084_s7 = sadd.f32 %s1249_s15, %s1247_s14 }
 0x1bd   :  { %1096 = sst [smem:[#allocation5]] %s914_s13 }
 0x1be   :  { %1492 = shalt.err (!%p1489_p10)
}
 0x1bf   :  { %s1513_s0 = smov [#allocation5]   ;;  %1100 = sst [smem:[#allocation6]] %s1084_s7 }
 0x1c0   :  { %1118 = dma.smem_to_hbm %s1513_s0, 16, %s2456_s8, [#allocation4]  }
 0x1c1   :  { %s1493_s6 = scalar_lea.hbm %s2457_s9, 16 }
 0x1c2   :  { %p1494_p11 = scmp.ne.s32.totalorder %s2457_s9, %s1493_s6  ;;  %p1497_p12 = scmp.lt.u32.totalorder %s1493_s6, %s2457_s9 }
 0x1c4   :  { %p1499_p13 = pnand %p1497_p12, %p1494_p11 }
 0x1c6   :  { %1502 = shalt.err (!%p1499_p13)
}
 0x1c7   :  { %s1514_s27 = smov [#allocation6]  }
 0x1c8   :  { %1126 = dma.smem_to_hbm %s1514_s27, 16, %s2457_s9, [#allocation7]  }
 0x1c9   :  { %1503 = dma.done.wait [#allocation3], 128  }
 0x1ca   :  { %1504 = vsyncadd [#allocation3], 4294967168 }
 0x1cb   :  { %1505 = dma.done.wait [#allocation4], 16  }
 0x1cc   :  { %1506 = vsyncadd [#allocation4], 4294967280 }
 0x1cd   :  { %1507 = dma.done.wait [#allocation7], 16  }
 0x1ce   :  { %1508 = vsyncadd [#allocation7], 4294967280 }
 0x1cf   :  { %1136 = sfence }
 0x1d0   :  { %1137 = vsyncpa [#allocation3], 1 }
 0x1d1   :  { %1138 = vsyncpa [#allocation4], 1 }
 0x1d2   :  { %1139 = vsyncpa [#allocation7], 1 }

</bundles_post_ra>
